<compile_context>
chip_gen: v7x
topology: tpu7x:2x2x1
jax: 0.10.0
libtpu: 0.0.40
codegen_flags: <defaults>
</compile_context>

<pallas_src>
import functools

import jax
import jax.numpy as jnp
from jax.experimental import pallas as pl
from jax.experimental.pallas import tpu as pltpu

EPS = 1e-5


def _conv_stats_kernel(x_ref, w_ref, b_ref, conv_ref, stats_ref):
    """Conv1d(Cin->Cout, k=3, pad=1) over L + per-channel partial BN sums."""
    x = x_ref[...].astype(jnp.float32)                     # (TB, Cin, L)
    TB, Cin, L = x.shape
    Cout = b_ref.shape[-1]

    # Channels to the lane axis -> one big-M matmul with all 3 taps fused on N.
    xt = jnp.transpose(x, (0, 2, 1)).reshape(TB * L, Cin)  # (TB*L, Cin)
    y = jnp.dot(xt, w_ref[...], preferred_element_type=jnp.float32)  # (TB*L, 3*Cout)
    y = y.reshape(TB, L, 3 * Cout)

    # out[l] = y_tap0[l-1] + y_tap1[l] + y_tap2[l+1]   (zeros beyond the edges)
    y0 = y[:, :, 0:Cout]
    y1 = y[:, :, Cout:2 * Cout]
    y2 = y[:, :, 2 * Cout:3 * Cout]
    l_idx = jax.lax.broadcasted_iota(jnp.int32, (TB, L, Cout), 1)
    y0s = jnp.where(l_idx == 0, 0.0, pltpu.roll(y0, shift=1, axis=1))
    y2s = jnp.where(l_idx == L - 1, 0.0, pltpu.roll(y2, shift=L - 1, axis=1))
    conv = y0s + y1 + y2s + b_ref[...]                     # (TB, L, Cout)

    # Back to NCL so the HBM store is lane-dense (L on the 128-lane axis).
    conv_t = jnp.transpose(conv, (0, 2, 1))                # (TB, Cout, L)
    conv_ref[...] = conv_t

    # Partial per-channel statistics for BatchNorm (sum, sum of squares).
    s = jnp.sum(jnp.sum(conv_t, axis=2, keepdims=True), axis=0)            # (Cout, 1)
    ss = jnp.sum(jnp.sum(conv_t * conv_t, axis=2, keepdims=True), axis=0)  # (Cout, 1)
    stats_ref[...] = jnp.concatenate([s, ss], axis=1)[None]                # (1, Cout, 2)


def _bn_relu_kernel(conv_ref, stats_ref, gamma_ref, beta_ref, o_ref, *, inv_n):
    """BatchNorm1d (training-mode batch stats, biased variance) + ReLU."""
    conv = conv_ref[...].astype(jnp.float32)               # (TB, Cout, L)
    stats = stats_ref[...].astype(jnp.float32)             # (Cout, 2)
    mean = stats[:, 0:1] * inv_n                           # (Cout, 1)
    var = stats[:, 1:2] * inv_n - mean * mean              # biased variance
    scale = gamma_ref[...] * jax.lax.rsqrt(var + EPS)      # (Cout, 1)
    shift = beta_ref[...] - mean * scale                   # (Cout, 1)
    o_ref[...] = jnp.maximum(conv * scale + shift, 0.0)


def temporal_conv_block(x, params, *, block_batch=None):
    """x: (B, Cin, L) float32  ->  (B, Cout, L) float32 (PyTorch NCL layout)."""
    B, C_in, L = x.shape
    C_out = params['conv_b'].shape[-1]
    TB = block_batch if block_batch is not None else B
    assert B % TB == 0, (B, TB)
    NB = B // TB

    conv, partial_stats = pl.pallas_call(
        _conv_stats_kernel,
        grid=(NB,),
        in_specs=[
            pl.BlockSpec((TB, C_in, L), lambda b: (b, 0, 0)),       # x tile
            pl.BlockSpec((C_in, 3 * C_out), lambda b: (0, 0)),      # fused conv weight
            pl.BlockSpec((1, C_out), lambda b: (0, 0)),             # conv bias
        ],
        out_specs=[
            pl.BlockSpec((TB, C_out, L), lambda b: (b, 0, 0)),      # conv output tile
            pl.BlockSpec((1, C_out, 2), lambda b: (b, 0, 0)),       # per-tile BN partials
        ],
        out_shape=(
            jax.ShapeDtypeStruct((B, C_out, L), jnp.float32),
            jax.ShapeDtypeStruct((NB, C_out, 2), jnp.float32),
        ),
        compiler_params=pltpu.CompilerParams(dimension_semantics=("parallel",)),
    )(x, params['conv_w'], params['conv_b'])

    # Tiny glue reduction: finalize the global per-channel sums.
    stats = jnp.sum(partial_stats, axis=0)                          # (Cout, 2)

    out = pl.pallas_call(
        functools.partial(_bn_relu_kernel, inv_n=1.0 / float(B * L)),
        grid=(NB,),
        in_specs=[
            pl.BlockSpec((TB, C_out, L), lambda b: (b, 0, 0)),      # conv tile
            pl.BlockSpec((C_out, 2), lambda b: (0, 0)),             # global sums
            pl.BlockSpec((C_out, 1), lambda b: (0, 0)),             # bn gamma
            pl.BlockSpec((C_out, 1), lambda b: (0, 0)),             # bn beta
        ],
        out_specs=pl.BlockSpec((TB, C_out, L), lambda b: (b, 0, 0)),
        out_shape=jax.ShapeDtypeStruct((B, C_out, L), jnp.float32),
        compiler_params=pltpu.CompilerParams(dimension_semantics=("parallel",)),
    )(conv, stats, params['bn_g'], params['bn_b'])
    return out


def init_params(key, c_in, c_out):
    k1, k2 = jax.random.split(key)
    # PyTorch Conv1d weight layout: (Cout, Cin, K=3)
    w_torch = jax.random.normal(k1, (c_out, c_in, 3), jnp.float32) / jnp.sqrt(3.0 * c_in)
    b = jax.random.normal(k2, (c_out,), jnp.float32) * 0.05
    # Fused kernel layout: W_all[c, k*Cout + o] = w_torch[o, c, k]   -> (Cin, 3*Cout)
    w_all = jnp.transpose(w_torch, (1, 2, 0)).reshape(c_in, 3 * c_out)
    return {
        'conv_w': w_all,                               # (Cin, 3*Cout) fused taps
        'conv_w_torch': w_torch,                       # kept only for the reference check
        'conv_b': b.reshape(1, c_out),                 # (1, Cout)
        'bn_g': jnp.ones((c_out, 1), jnp.float32),     # fresh BatchNorm1d affine
        'bn_b': jnp.zeros((c_out, 1), jnp.float32),
    }


def temporal_conv_block_ref(x, params):
    """Plain-JAX reference with identical semantics (training-mode BatchNorm)."""
    w = params['conv_w_torch']                         # (Cout, Cin, 3)
    c_out = w.shape[0]
    y = jax.lax.conv_general_dilated(
        x, w, window_strides=(1,), padding=((1, 1),),
        dimension_numbers=('NCH', 'OIH', 'NCH'),
        precision=jax.lax.Precision.HIGHEST)
    y = y + params['conv_b'].reshape(1, c_out, 1)
    mean = jnp.mean(y, axis=(0, 2), keepdims=True)
    var = jnp.mean(jnp.square(y), axis=(0, 2), keepdims=True) - jnp.square(mean)
    yn = (y - mean) * jax.lax.rsqrt(var + EPS)
    yn = yn * params['bn_g'].reshape(1, c_out, 1) + params['bn_b'].reshape(1, c_out, 1)
    return jnp.maximum(yn, 0.0)


if __name__ == "__main__":
    # Small, module-consistent shapes: TemporalConvBlock(in_channels=64, out_channels=32)
    batch, c_in, c_out, length = 8, 64, 32, 128

    key = jax.random.PRNGKey(0)
    kx, kp = jax.random.split(key)
    x = jax.random.normal(kx, (batch, c_in, length), jnp.float32)
    params = init_params(kp, c_in, c_out)

    fn = jax.jit(functools.partial(temporal_conv_block, block_batch=2))
    out = jax.block_until_ready(fn(x, params))

    assert out.shape == (batch, c_out, length), out.shape
    assert bool(jnp.all(jnp.isfinite(out)))

    ref = temporal_conv_block_ref(x, params)
    max_err = float(jnp.max(jnp.abs(out - ref)))
    assert max_err < 2e-3, f"mismatch vs reference: {max_err}"

    print("KERNEL_OK")
</pallas_src>

<mosaic_0001>
module attributes {stable_mosaic.version = 11 : i64} {
  func.func @_bn_relu_kernel(%arg0: i32, %arg1: memref<2x32x128xf32, #tpu.memory_space<vmem>>, %arg2: memref<32x2xf32, #tpu.memory_space<vmem>>, %arg3: memref<32x1xf32, #tpu.memory_space<vmem>>, %arg4: memref<32x1xf32, #tpu.memory_space<vmem>>, %arg5: memref<2x32x128xf32, #tpu.memory_space<vmem>>) attributes {dimension_semantics = [#tpu.dimension_semantics<parallel>], iteration_bounds = array<i64: 4>, scalar_prefetch = 0 : i64, scratch_operands = 0 : i64, tpu.core_type = #tpu.core_type<tc>, window_params = [{transform_indices = @transform_0, window_bounds = array<i64: 2, 32, 128>}, {pipeline_mode = #tpu.pipeline_mode<synchronous>, transform_indices = @transform_1, window_bounds = array<i64: 32, 2>}, {pipeline_mode = #tpu.pipeline_mode<synchronous>, transform_indices = @transform_2, window_bounds = array<i64: 32, 1>}, {pipeline_mode = #tpu.pipeline_mode<synchronous>, transform_indices = @transform_3, window_bounds = array<i64: 32, 1>}, {transform_indices = @transform_4, window_bounds = array<i64: 2, 32, 128>}]} {
    %c0 = arith.constant 0 : index
    %c0_0 = arith.constant 0 : index
    %c0_1 = arith.constant 0 : index
    %0 = vector.load %arg1[%c0, %c0_0, %c0_1] : memref<2x32x128xf32, #tpu.memory_space<vmem>>, vector<2x32x128xf32>
    %c0_2 = arith.constant 0 : index
    %c0_3 = arith.constant 0 : index
    %1 = vector.load %arg2[%c0_2, %c0_3] : memref<32x2xf32, #tpu.memory_space<vmem>>, vector<32x2xf32>
    %2 = vector.extract_strided_slice %1 {offsets = [0, 0], sizes = [32, 1], strides = [1, 1]} : vector<32x2xf32> to vector<32x1xf32>
    %cst = arith.constant 9.765625E-4 : f32
    %3 = vector.broadcast %cst : f32 to vector<32x1xf32>
    %4 = arith.mulf %2, %3 : vector<32x1xf32>
    %5 = vector.extract_strided_slice %1 {offsets = [0, 1], sizes = [32, 1], strides = [1, 1]} : vector<32x2xf32> to vector<32x1xf32>
    %cst_4 = arith.constant 9.765625E-4 : f32
    %6 = vector.broadcast %cst_4 : f32 to vector<32x1xf32>
    %7 = arith.mulf %5, %6 : vector<32x1xf32>
    %8 = arith.mulf %4, %4 : vector<32x1xf32>
    %9 = arith.subf %7, %8 : vector<32x1xf32>
    %c0_5 = arith.constant 0 : index
    %c0_6 = arith.constant 0 : index
    %10 = vector.load %arg3[%c0_5, %c0_6] : memref<32x1xf32, #tpu.memory_space<vmem>>, vector<32x1xf32>
    %cst_7 = arith.constant 9.99999974E-6 : f32
    %11 = vector.broadcast %cst_7 : f32 to vector<32x1xf32>
    %12 = arith.addf %9, %11 : vector<32x1xf32>
    %13 = math.rsqrt %12 : vector<32x1xf32>
    %14 = arith.mulf %10, %13 : vector<32x1xf32>
    %c0_8 = arith.constant 0 : index
    %c0_9 = arith.constant 0 : index
    %15 = vector.load %arg4[%c0_8, %c0_9] : memref<32x1xf32, #tpu.memory_space<vmem>>, vector<32x1xf32>
    %16 = arith.mulf %4, %14 : vector<32x1xf32>
    %17 = arith.subf %15, %16 : vector<32x1xf32>
    %18 = vector.shape_cast %14 : vector<32x1xf32> to vector<1x32x1xf32>
    %19 = vector.broadcast %18 : vector<1x32x1xf32> to vector<2x32x128xf32>
    %20 = arith.mulf %0, %19 : vector<2x32x128xf32>
    %21 = vector.shape_cast %17 : vector<32x1xf32> to vector<1x32x1xf32>
    %22 = vector.broadcast %21 : vector<1x32x1xf32> to vector<2x32x128xf32>
    %23 = arith.addf %20, %22 : vector<2x32x128xf32>
    %cst_10 = arith.constant 0.000000e+00 : f32
    %24 = vector.broadcast %cst_10 : f32 to vector<2x32x128xf32>
    %25 = arith.maximumf %23, %24 : vector<2x32x128xf32>
    %c0_11 = arith.constant 0 : index
    %c0_12 = arith.constant 0 : index
    %c0_13 = arith.constant 0 : index
    %26 = vector.load %arg5[%c0_11, %c0_12, %c0_13] : memref<2x32x128xf32, #tpu.memory_space<vmem>>, vector<2x32x128xf32>
    tpu.vector_store %arg5[%c0_11, %c0_12, %c0_13], %25 {strides = array<i32>} : memref<2x32x128xf32, #tpu.memory_space<vmem>>, vector<2x32x128xf32>,
    return
  }
  func.func @transform_0(%arg0: i32) -> (i32, i32, i32) {
    %c0_i32 = arith.constant 0 : i32
    %c0_i32_0 = arith.constant 0 : i32
    %c0_i32_1 = arith.constant 0 : i32
    return %arg0, %c0_i32, %c0_i32_0 : i32, i32, i32
  }
  func.func @transform_1(%arg0: i32) -> (i32, i32) {
    %c0_i32 = arith.constant 0 : i32
    %c0_i32_0 = arith.constant 0 : i32
    %c0_i32_1 = arith.constant 0 : i32
    return %c0_i32, %c0_i32_0 : i32, i32
  }
  func.func @transform_2(%arg0: i32) -> (i32, i32) {
    %c0_i32 = arith.constant 0 : i32
    %c0_i32_0 = arith.constant 0 : i32
    %c0_i32_1 = arith.constant 0 : i32
    return %c0_i32, %c0_i32_0 : i32, i32
  }
  func.func @transform_3(%arg0: i32) -> (i32, i32) {
    %c0_i32 = arith.constant 0 : i32
    %c0_i32_0 = arith.constant 0 : i32
    %c0_i32_1 = arith.constant 0 : i32
    return %c0_i32, %c0_i32_0 : i32, i32
  }
  func.func @transform_4(%arg0: i32) -> (i32, i32, i32) {
    %c0_i32 = arith.constant 0 : i32
    %c0_i32_0 = arith.constant 0 : i32
    %c0_i32_1 = arith.constant 0 : i32
    return %arg0, %c0_i32, %c0_i32_0 : i32, i32, i32
  }
}

module attributes {stable_mosaic.version = 11 : i64} {
  func.func @_conv_stats_kernel(%arg0: i32, %arg1: memref<2x64x128xf32, #tpu.memory_space<vmem>>, %arg2: memref<64x96xf32, #tpu.memory_space<vmem>>, %arg3: memref<1x32xf32, #tpu.memory_space<vmem>>, %arg4: memref<2x32x128xf32, #tpu.memory_space<vmem>>, %arg5: memref<1x32x2xf32, #tpu.memory_space<vmem>>) attributes {dimension_semantics = [#tpu.dimension_semantics<parallel>], iteration_bounds = array<i64: 4>, scalar_prefetch = 0 : i64, scratch_operands = 0 : i64, tpu.core_type = #tpu.core_type<tc>, window_params = [{transform_indices = @transform_0, window_bounds = array<i64: 2, 64, 128>}, {pipeline_mode = #tpu.pipeline_mode<synchronous>, transform_indices = @transform_1, window_bounds = array<i64: 64, 96>}, {pipeline_mode = #tpu.pipeline_mode<synchronous>, transform_indices = @transform_2, window_bounds = array<i64: 1, 32>}, {transform_indices = @transform_3, window_bounds = array<i64: 2, 32, 128>}, {transform_indices = @transform_4, window_bounds = array<i64: 1, 32, 2>}]} {
    %c0 = arith.constant 0 : index
    %c0_0 = arith.constant 0 : index
    %c0_1 = arith.constant 0 : index
    %0 = vector.load %arg1[%c0, %c0_0, %c0_1] : memref<2x64x128xf32, #tpu.memory_space<vmem>>, vector<2x64x128xf32>
    %1 = tpu.transpose %0, [0, 2, 1] : vector<2x64x128xf32> -> vector<2x128x64xf32>
    %2 = vector.shape_cast %1 : vector<2x128x64xf32> to vector<256x64xf32>
    %c0_2 = arith.constant 0 : index
    %c0_3 = arith.constant 0 : index
    %3 = vector.load %arg2[%c0_2, %c0_3] : memref<64x96xf32, #tpu.memory_space<vmem>>, vector<64x96xf32>
    %cst = arith.constant dense<0.000000e+00> : vector<256x96xf32>
    %4 = tpu.matmul %2, %3, %cst {dimension_numbers = #tpu.dot_dimension_numbers<[1], [0], [0], [1], [0, 0, 1, 1], [], []>} : vector<256x64xf32>, vector<64x96xf32>, vector<256x96xf32> -> vector<256x96xf32>
    %5 = vector.shape_cast %4 : vector<256x96xf32> to vector<2x128x96xf32>
    %6 = vector.extract_strided_slice %5 {offsets = [0, 0, 0], sizes = [2, 128, 32], strides = [1, 1, 1]} : vector<2x128x96xf32> to vector<2x128x32xf32>
    %7 = vector.extract_strided_slice %5 {offsets = [0, 0, 32], sizes = [2, 128, 32], strides = [1, 1, 1]} : vector<2x128x96xf32> to vector<2x128x32xf32>
    %8 = vector.extract_strided_slice %5 {offsets = [0, 0, 64], sizes = [2, 128, 32], strides = [1, 1, 1]} : vector<2x128x96xf32> to vector<2x128x32xf32>
    %9 = tpu.iota {dimensions = array<i32: 1>} : vector<2x128x32xi32>
    %c0_i32 = arith.constant 0 : i32
    %10 = vector.broadcast %c0_i32 : i32 to vector<2x128x32xi32>
    %11 = arith.cmpi eq, %9, %10 : vector<2x128x32xi32>
    %c1_i32 = arith.constant 1 : i32
    %12 = tpu.dynamic_rotate %6 by %c1_i32 dim 1 : vector<2x128x32xf32>, i32 -> vector<2x128x32xf32>
    %cst_4 = arith.constant 0.000000e+00 : f32
    %13 = vector.broadcast %cst_4 : f32 to vector<2x128x32xf32>
    %14 = arith.select %11, %13, %12 : vector<2x128x32xi1>, vector<2x128x32xf32>
    %c127_i32 = arith.constant 127 : i32
    %15 = vector.broadcast %c127_i32 : i32 to vector<2x128x32xi32>
    %16 = arith.cmpi eq, %9, %15 : vector<2x128x32xi32>
    %c127_i32_5 = arith.constant 127 : i32
    %17 = tpu.dynamic_rotate %8 by %c127_i32_5 dim 1 : vector<2x128x32xf32>, i32 -> vector<2x128x32xf32>
    %cst_6 = arith.constant 0.000000e+00 : f32
    %18 = vector.broadcast %cst_6 : f32 to vector<2x128x32xf32>
    %19 = arith.select %16, %18, %17 : vector<2x128x32xi1>, vector<2x128x32xf32>
    %20 = arith.addf %14, %7 : vector<2x128x32xf32>
    %21 = arith.addf %20, %19 : vector<2x128x32xf32>
    %c0_7 = arith.constant 0 : index
    %c0_8 = arith.constant 0 : index
    %22 = vector.load %arg3[%c0_7, %c0_8] : memref<1x32xf32, #tpu.memory_space<vmem>>, vector<1x32xf32>
    %23 = vector.shape_cast %22 : vector<1x32xf32> to vector<1x1x32xf32>
    %24 = vector.broadcast %23 : vector<1x1x32xf32> to vector<2x128x32xf32>
    %25 = arith.addf %21, %24 : vector<2x128x32xf32>
    %26 = tpu.transpose %25, [0, 2, 1] : vector<2x128x32xf32> -> vector<2x32x128xf32>
    %c0_9 = arith.constant 0 : index
    %c0_10 = arith.constant 0 : index
    %c0_11 = arith.constant 0 : index
    %27 = vector.load %arg4[%c0_9, %c0_10, %c0_11] : memref<2x32x128xf32, #tpu.memory_space<vmem>>, vector<2x32x128xf32>
    tpu.vector_store %arg4[%c0_9, %c0_10, %c0_11], %26 {strides = array<i32>} : memref<2x32x128xf32, #tpu.memory_space<vmem>>, vector<2x32x128xf32>,
    %cst_12 = arith.constant dense<0.000000e+00> : vector<2x32xf32>
    %28 = vector.multi_reduction <add>, %26, %cst_12 [2] : vector<2x32x128xf32> to vector<2x32xf32>
    %29 = vector.shape_cast %28 : vector<2x32xf32> to vector<2x32x1xf32>
    %cst_13 = arith.constant dense<0.000000e+00> : vector<32x1xf32>
    %30 = vector.multi_reduction <add>, %29, %cst_13 [0] : vector<2x32x1xf32> to vector<32x1xf32>
    %31 = arith.mulf %26, %26 : vector<2x32x128xf32>
    %cst_14 = arith.constant dense<0.000000e+00> : vector<2x32xf32>
    %32 = vector.multi_reduction <add>, %31, %cst_14 [2] : vector<2x32x128xf32> to vector<2x32xf32>
    %33 = vector.shape_cast %32 : vector<2x32xf32> to vector<2x32x1xf32>
    %cst_15 = arith.constant dense<0.000000e+00> : vector<32x1xf32>
    %34 = vector.multi_reduction <add>, %33, %cst_15 [0] : vector<2x32x1xf32> to vector<32x1xf32>
    %35 = tpu.concatenate %30, %34 in 1 : vector<32x1xf32>, vector<32x1xf32> -> vector<32x2xf32>
    %36 = vector.shape_cast %35 : vector<32x2xf32> to vector<1x32x2xf32>
    %c0_16 = arith.constant 0 : index
    %c0_17 = arith.constant 0 : index
    %c0_18 = arith.constant 0 : index
    %37 = vector.load %arg5[%c0_16, %c0_17, %c0_18] : memref<1x32x2xf32, #tpu.memory_space<vmem>>, vector<1x32x2xf32>
    tpu.vector_store %arg5[%c0_16, %c0_17, %c0_18], %36 {strides = array<i32>} : memref<1x32x2xf32, #tpu.memory_space<vmem>>, vector<1x32x2xf32>,
    return
  }
  func.func @transform_0(%arg0: i32) -> (i32, i32, i32) {
    %c0_i32 = arith.constant 0 : i32
    %c0_i32_0 = arith.constant 0 : i32
    %c0_i32_1 = arith.constant 0 : i32
    return %arg0, %c0_i32, %c0_i32_0 : i32, i32, i32
  }
  func.func @transform_1(%arg0: i32) -> (i32, i32) {
    %c0_i32 = arith.constant 0 : i32
    %c0_i32_0 = arith.constant 0 : i32
    %c0_i32_1 = arith.constant 0 : i32
    return %c0_i32, %c0_i32_0 : i32, i32
  }
  func.func @transform_2(%arg0: i32) -> (i32, i32) {
    %c0_i32 = arith.constant 0 : i32
    %c0_i32_0 = arith.constant 0 : i32
    %c0_i32_1 = arith.constant 0 : i32
    return %c0_i32, %c0_i32_0 : i32, i32
  }
  func.func @transform_3(%arg0: i32) -> (i32, i32, i32) {
    %c0_i32 = arith.constant 0 : i32
    %c0_i32_0 = arith.constant 0 : i32
    %c0_i32_1 = arith.constant 0 : i32
    return %arg0, %c0_i32, %c0_i32_0 : i32, i32, i32
  }
  func.func @transform_4(%arg0: i32) -> (i32, i32, i32) {
    %c0_i32 = arith.constant 0 : i32
    %c0_i32_0 = arith.constant 0 : i32
    %c0_i32_1 = arith.constant 0 : i32
    return %arg0, %c0_i32, %c0_i32_0 : i32, i32, i32
  }
}

</mosaic_0001>

<bundles_post_ra>
// kernel: temporal_conv_block.3
= control target key start
LH: loop header
LB: loop body
LE: loop exit
PB: predicated region body
PF: predicated region fallthrough
CT: control target
= control target key end

     0   :  { %9 = vsyncpa [#allocation3], 0  ;;  %s743_s0 = inlined_call_operand.vmem [shape: f32[8,32,128], index: 0, kind: input, shape index: {}]   ;;  %s744_s1 = inlined_call_operand.vmem [shape: f32[32,2], index: 1, kind: input, shape index: {}]   ;;  %s745_s2 = inlined_call_operand.vmem [shape: f32[32,1], index: 2, kind: input, shape index: {}]   ;;  %s746_s3 = inlined_call_operand.vmem [shape: f32[32,1], index: 3, kind: input, shape index: {}]   ;;  %s747_s4 = inlined_call_operand.hbm [shape: f32[8,32,128], index: 4, kind: output, shape index: {}]  }
   0x1   :  { %11 = vsyncpa [#allocation3 + $0x1], 0  ;;  %s601_s15 = smov 0   ;;  %s603_s16 = smov 0  }
   0x2   :  { %s605_s17 = smov 0   ;;  %s607_s18 = smov 0  }
   0x3 LB: > { %s622_s19 = sadd.s32 4294967295, %s568_s18   ;;  %s435_s20 = sadd.s32 4294967294, %s568_s18   ;;  %s568_s18 = sphi %s607_s18, %s753_s18   ;;  %s564_s17 = sphi %s605_s17, %s752_s17   ;;  %s560_s16 = sphi %s603_s16, %s751_s16   ;;  %s556_s15 = sphi %s601_s15, %s750_s15  }
   0x4   : > { %s626_s21 = sadd.s32 1, %s568_s18   ;;  %s113_s22 = sadd.s32 1, %s564_s17 }
   0x5   : > { %s110_s23 = ssub.s32 %s568_s18, %s626_s21  ;;  %p123_p0 = scmp.ne.s32.totalorder %s564_s17, %s560_s16 }
   0x6   : > { %p111_p1 = scmp.eq.s32.totalorder %s110_s23, 0  ;;  %p124_p2 = scmp.eq.s32.totalorder %s622_s19, 3 }
   0x7   : > { %p129_p3 = scmp.ne.s32.totalorder %s560_s16, %s556_s15  ;;  %p130_p4 = scmp.eq.s32.totalorder %s435_s20, 3 }
   0x8   : > { %s637_s24 = scalar_select %p111_p1, %s564_s17, %s113_s22  }
   0x9   : > { %p639_p5 = por %p124_p2, %p123_p0  ;;  %p643_p6 = por %p130_p4, %p129_p3 }
   0xa   : > { %p438_p7 = scmp.ge.s32.totalorder %s568_s18, 1  ;;  %p167_p8 = scmp.lt.s32.totalorder %s568_s18, 5 }
   0xc   : > { %p168_p9 = pnand %p438_p7, %p167_p8 }
   0xd   : > { %v210_v0 = vld [vmem:[%s744_s1] sm:$0xff] (!%p168_p9)  ;;  %v212_v1 = vld [vmem:[%s744_s1 + $0x10] sm:$0xff] (!%p168_p9)  ;;  %v211_v2 = vld [vmem:[%s744_s1 + $0x8] sm:$0xff] (!%p168_p9)  ;;  %s570_s9 = smov (!%p168_p9), 1   ;;  %v571_v20 = vmov (!%p168_p9), 0   ;;  %s572_s10 = smov (!%p168_p9), 127  }
   0xe   : > { %171 = sbr.rel (%p168_p9) target bundleno = 429 (0x1ad), region = 36  ;;  %v214_v3 = vmul.f32 (!%p168_p9), 0.0009765625, %v210_v0  ;;  %v216_v4 = vmul.f32 (!%p168_p9), 0.0009765625, %v212_v1  ;;  %v215_v5 = vmul.f32 (!%p168_p9), 0.0009765625, %v211_v2  ;;  %v213_v6 = vld [vmem:[%s744_s1 + $0x18] sm:$0xff] (!%p168_p9)  ;;  %496 = vset.pattern.permute.xlu0 (!%p168_p9), %v571_v20  ;;  %497 = vset.pattern.permute.xlu1 (!%p168_p9), %v571_v20  ;;  %v242_v29 = vld [vmem:[%s745_s2] sm:$0xff] (!%p168_p9) }
   0xf   : > { %v217_v7 = vmul.f32 (!%p168_p9), 0.0009765625, %v213_v6  ;;  %v243_v32 = vld [vmem:[%s745_s2 + $0x8] sm:$0xff] (!%p168_p9)  ;;  %v244_v35 = vld [vmem:[%s745_s2 + $0x10] sm:$0xff] (!%p168_p9)  ;;  %v245_v37 = vld [vmem:[%s745_s2 + $0x18] sm:$0xff] (!%p168_p9)  ;;  %s191_s20 = sand.u32 (!%p168_p9), 1, %s560_s16   ;;  %s451_s23 = sshll.u32 (!%p168_p9), %s622_s19, 10 }
  0x10   : > { %v218_v8 = vmul.f32 (!%p168_p9), %v214_v3, %v214_v3  ;;  %v220_v9 = vmul.f32 (!%p168_p9), %v216_v4, %v216_v4  ;;  %v219_v10 = vmul.f32 (!%p168_p9), %v215_v5, %v215_v5  ;;  %v275_v43 = vld [vmem:[%s746_s3 + $0x8] sm:$0xff] (!%p168_p9)  ;;  %v274_v44 = vld [vmem:[%s746_s3] sm:$0xff] (!%p168_p9)  ;;  %v277_v49 = vld [vmem:[%s746_s3 + $0x18] sm:$0xff] (!%p168_p9)  ;;  %s439_s22 = sshll.u32 (!%p168_p9), %s191_s20, 6  ;;  %s696_s5 = scalar_lea.hbm (!%p168_p9), %s747_s4, %s451_s23 }
  0x11   : > { %v221_v11 = vmul.f32 (!%p168_p9), %v217_v7, %v217_v7  ;;  %v276_v50 = vld [vmem:[%s746_s3 + $0x10] sm:$0xff] (!%p168_p9)  ;;  %s193_s27 = scalar_lea.vmem (!%p168_p9), [#allocation2], %s439_s22  ;;  %s573_s7 = smov (!%p168_p9), [#allocation2]  }
  0x12   : > { %226 = vrot.lane.b32.xlu0 (!%p168_p9), %v218_v8, %s570_s9  ;;  %230 = vrot.lane.b32.xlu1 (!%p168_p9), %v220_v9, %s570_s9  ;;  %s373_s28 = sshll.u32 (!%p168_p9), %s193_s27, 4  ;;  %s510_s8 = sshll.u32 (!%p168_p9), %s573_s7, 4  ;;  %s698_s28 = int_to_ptr.vmem [resolvable:$true] %s373_s28  ;;  %s511_s8 = int_to_ptr.vmem [resolvable:$false] %s510_s8 }
  0x13   : > { %s506_s6 = scalar_lea.vmem (!%p168_p9), %s698_s28, 1024  ;;  %p513_p0 = scmp.lt.s32.totalorder (!%p168_p9), %s698_s28, %s511_s8 }
  0x14   : > { %p507_p11 = scmp.ne.s32.totalorder (!%p168_p9), %s698_s28, %s506_s6 }
  0x16   : > { %228 = vrot.lane.b32.xlu0 %v219_v10, %s570_s9  ;;  %232 = vrot.lane.b32.xlu1 %v221_v11, %s570_s9  ;;  %p508_p12 = pnand %p507_p11, %p639_p5  ;;  %s512_s9 = scalar_lea.vmem %s511_s8, 2048 }
  0x17   : > { %p514_p1 = scmp.lt.s32.totalorder %s512_s9, %s506_s6 }
  0x18   : > { %p509_p13 = pneg %p508_p12 }
  0x19   : > { %p515_p2 = por %p514_p1, %p513_p0 }
  0x1b   : > { %p516_p3 = pnand %p515_p2, %p509_p13 }
  0x84   : > { %v227_v12 = vpop.permute.xlu0 %226  ;;  %v231_v13 = vpop.permute.xlu1 %230 }
  0x85   : > { %v238_v14 = vsub.f32 %v214_v3, %v227_v12  ;;  %v240_v15 = vsub.f32 %v216_v4, %v231_v13 }
  0x87   : > { %v246_v16 = vadd.f32 1e-05, %v238_v14  ;;  %v248_v17 = vadd.f32 1e-05, %v240_v15 }
  0x88   : > { %v229_v18 = vpop.permute.xlu0 %228  ;;  %v233_v19 = vpop.permute.xlu1 %232 }
  0x89   : > { %498 = vrsqrt.f32 %v246_v16  ;;  %v239_v21 = vsub.f32 %v215_v5, %v229_v18  ;;  %v241_v22 = vsub.f32 %v217_v7, %v233_v19 }
  0x8a   : > { %500 = vrsqrt.f32 %v248_v17 }
  0x8b   : > { %v247_v23 = vadd.f32 1e-05, %v239_v21  ;;  %v249_v24 = vadd.f32 1e-05, %v241_v22 }
  0x8d   : > { %502 = vrsqrt.f32 %v247_v23 }
  0x8e   : > { %504 = vrsqrt.f32 %v249_v24 }
  0x93   : > { %v499_v25 = vpop.eup %498 }
  0x94   : > { %258 = vrot.lane.b32.xlu0 %v499_v25, %s572_s10  ;;  %v501_v26 = vpop.eup %500 }
  0x97   : > { %v503_v27 = vpop.eup %502 }
  0x98   : > { %262 = vrot.lane.b32.xlu0 %v501_v26, %s572_s10  ;;  %260 = vrot.lane.b32.xlu1 %v503_v27, %s572_s10  ;;  %v505_v28 = vpop.eup %504 }
  0x9c   : > { %264 = vrot.lane.b32.xlu1 %v505_v28, %s572_s10  ;;  %s440_s10 = sshll.u32 %s622_s19, 1  ;;  %s702_s19 = scalar_lea.sflag [#allocation3], %s191_s20 }
  0x9d   : > { %p195_p10 = scmp.lt.s32.totalorder %s440_s10, 7 }
  0x9f   : > { %s755_s10 = smov (!%p195_p10, %s440_s10), 7 }
  0xa0   : > { %s449_s11 = sshll.u32 %s755_s10, 5 }
  0xa1   : > { %s199_s14 = scalar_lea.vmem %s743_s0, %s449_s11 }
  0xa2   : > { %v202_v55 = vld [vmem:[%s199_s14] sm:$0xff]  ;;  %v203_v57 = vld [vmem:[%s199_s14 + $0x8] sm:$0xff]  ;;  %v204_v61 = vld [vmem:[%s199_s14 + $0x10] sm:$0xff] }
  0xa3   : > { %v206_v56 = vld [vmem:[%s199_s14 + $0x20] sm:$0xff]  ;;  %v207_v58 = vld [vmem:[%s199_s14 + $0x28] sm:$0xff]  ;;  %v208_v2 = vld [vmem:[%s199_s14 + $0x30] sm:$0xff] }
 0x106   : > { %v259_v30 = vpop.permute.xlu0 %258 }
 0x107   : > { %v270_v31 = vmul.f32 %v259_v30, %v242_v29 }
 0x109   : > { %288 = vperm.xlu0 %496, %v270_v31   ;;  %v278_v39 = vmul.f32 %v270_v31, %v214_v3  ;;  %v205_v3 = vld [vmem:[%s199_s14 + $0x18] sm:$0xff] }
 0x10a   : > { %v261_v33 = vpop.permute.xlu1 %260  ;;  %v263_v36 = vpop.permute.xlu0 %262 }
 0x10b   : > { %v271_v34 = vmul.f32 %v261_v33, %v243_v32  ;;  %v272_v41 = vmul.f32 %v263_v36, %v244_v35  ;;  %v282_v48 = vsub.f32 %v274_v44, %v278_v39 }
 0x10d   : > { %293 = vperm.xlu1 %497, %v271_v34   ;;  %v279_v40 = vmul.f32 %v271_v34, %v215_v5  ;;  %v280_v45 = vmul.f32 %v272_v41, %v216_v4  ;;  %v209_v4 = vld [vmem:[%s199_s14 + $0x38] sm:$0xff] }
 0x10e   : > { %v265_v38 = vpop.permute.xlu1 %264 }
 0x10f   : > { %v273_v42 = vmul.f32 %v265_v38, %v245_v37  ;;  %v283_v47 = vsub.f32 %v275_v43, %v279_v40  ;;  %v284_v52 = vsub.f32 %v276_v50, %v280_v45 }
 0x111   : > { %303 = vperm.xlu0 %496, %v273_v42   ;;  %298 = vperm.xlu1 %497, %v272_v41   ;;  %v281_v46 = vmul.f32 %v273_v42, %v217_v7 }
 0x113   : > { %v285_v51 = vsub.f32 %v277_v49, %v281_v46 }
 0x115   : > { %321 = vperm.xlu0 %496, %v283_v47   ;;  %316 = vperm.xlu1 %497, %v282_v48  }
 0x119   : > { %331 = vperm.xlu0 %496, %v285_v51   ;;  %326 = vperm.xlu1 %497, %v284_v52  }
 0x188   : > { %v289_v53 = vpop.permute.xlu0 %288 }
 0x189   : > { %v306_v62 = vmul.f32 %v289_v53, %v202_v55  ;;  %v310_v63 = vmul.f32 %v289_v53, %v206_v56 }
 0x18c   : > { %v294_v54 = vpop.permute.xlu1 %293 }
 0x18d   : > { %v307_v0 = vmul.f32 %v294_v54, %v203_v57  ;;  %v311_v1 = vmul.f32 %v294_v54, %v207_v58 }
 0x190   : > { %v299_v59 = vpop.permute.xlu1 %298  ;;  %v304_v60 = vpop.permute.xlu0 %303 }
 0x191   : > { %v308_v11 = vmul.f32 %v299_v59, %v204_v61  ;;  %v312_v12 = vmul.f32 %v299_v59, %v208_v2  ;;  %v309_v13 = vmul.f32 %v304_v60, %v205_v3  ;;  %v313_v14 = vmul.f32 %v304_v60, %v209_v4 }
 0x194   : > { %v317_v5 = vpop.permute.xlu1 %316  ;;  %v322_v6 = vpop.permute.xlu0 %321 }
 0x195   : > { %v334_v7 = vadd.f32 %v317_v5, %v306_v62  ;;  %v338_v8 = vadd.f32 %v317_v5, %v310_v63  ;;  %v335_v9 = vadd.f32 %v322_v6, %v307_v0  ;;  %v339_v10 = vadd.f32 %v322_v6, %v311_v1 }
 0x197   : > { %v342_v15 = vmax.f32 %v334_v7, 0.0  ;;  %v346_v16 = vmax.f32 %v338_v8, 0.0  ;;  %v343_v17 = vmax.f32 %v335_v9, 0.0  ;;  %v347_v18 = vmax.f32 %v339_v10, 0.0 }
 0x198   : > { %v327_v19 = vpop.permute.xlu1 %326  ;;  %v332_v20 = vpop.permute.xlu0 %331 }
 0x199   : > { %350 = vst [vmem:[%s193_s27] sm:$0xff] %v342_v15  ;;  %354 = vst [vmem:[%s193_s27 + $0x20] sm:$0xff] %v346_v16  ;;  %v336_v21 = vadd.f32 %v327_v19, %v308_v11  ;;  %v340_v22 = vadd.f32 %v327_v19, %v312_v12  ;;  %v337_v23 = vadd.f32 %v332_v20, %v309_v13 }
 0x19a   : > { %351 = vst [vmem:[%s193_s27 + $0x8] sm:$0xff] %v343_v17  ;;  %355 = vst [vmem:[%s193_s27 + $0x28] sm:$0xff] %v347_v18  ;;  %v341_v24 = vadd.f32 %v332_v20, %v313_v14 }
 0x19b   : > { %v344_v25 = vmax.f32 %v336_v21, 0.0  ;;  %v348_v26 = vmax.f32 %v340_v22, 0.0  ;;  %v345_v27 = vmax.f32 %v337_v23, 0.0 }
 0x19c   : > { %v349_v28 = vmax.f32 %v341_v24, 0.0 }
 0x19d   : > { %352 = vst [vmem:[%s193_s27 + $0x10] sm:$0xff] %v344_v25  ;;  %356 = vst [vmem:[%s193_s27 + $0x30] sm:$0xff] %v348_v26 }
 0x19e   : > { %353 = vst [vmem:[%s193_s27 + $0x18] sm:$0xff] %v345_v27  ;;  %357 = vst [vmem:[%s193_s27 + $0x38] sm:$0xff] %v349_v28 }
 0x19f   : > { %519 = shalt.err (!%p516_p3)
}
 0x1a0   : > { %s520_s10 = scalar_lea.hbm %s696_s5, 1024  ;;  %s524_s13 = scalar_lea.hbm %s747_s4, 4096 }
 0x1a1   : > { %p521_p4 = scmp.ne.s32.totalorder %s696_s5, %s520_s10  ;;  %p525_p9 = scmp.lt.u32.totalorder %s696_s5, %s747_s4 }
 0x1a2   : > { %p526_p10 = scmp.lt.u32.totalorder %s524_s13, %s520_s10  ;;  %p528_p12 = scmp.lt.u32.totalorder %s520_s10, %s696_s5 }
 0x1a3   : > { %p522_p7 = pnand %p521_p4, %p639_p5 }
 0x1a4   : > { %p527_p11 = por %p526_p10, %p525_p9 }
 0x1a5   : > { %p523_p8 = pneg %p522_p7 }
 0x1a6   : > { %p529_p13 = por %p528_p12, %p527_p11 }
 0x1a8   : > { %p530_p0 = pnand %p529_p13, %p523_p8 }
 0x1aa   : > { %533 = shalt.err (!%p530_p0)
}
 0x1ab   : > { %s574_s22 = smov 128   ;;  %s575_s23 = smov 8  }
 0x1ac   : > { %452 = dma.vmem_to_hbm [thread:$0]  (%p639_p5), %s698_s28, 1024, %s696_s5, %s702_s19, %s574_s22, %s574_s22, %s575_s23  }
 0x1ad PF: > { %p458_p1 = scmp.ge.s32.totalorder %s568_s18, 2  ;;  %s388_s27 = sand.u32 1, %s556_s15  }
 0x1ae   : > { %s389_s29 = scalar_lea.sflag [#allocation3], %s388_s27 }
 0x1af   : > { %p455_p2 = pnand %p458_p1, %p643_p6 }
 0x1b1   : > { %551 = dma.done.wait (!%p455_p2), %s389_s29, 1024  }
 0x1b2   : > { %553 = vsyncadd (!%p455_p2), %s389_s29, 4294966272  ;;  %p14_p3 = scmp.ge.s32.totalorder %s626_s21, 6   ;;  %s750_s15 = smov %s560_s16 }
 0x1b3   : > { %s751_s16 = smov %s564_s17  ;;  %s752_s17 = smov %s637_s24 }
 0x1b4   : > { %s753_s18 = smov %s626_s21  ;;  %16 = sbr.rel (!%p14_p3) target bundleno = 3 (0x3), region = 71 }
 0x1bb   :  { %394 = vsyncpa [#allocation3], 1 }
 0x1bc   :  { %396 = vsyncpa [#allocation3 + $0x1], 1 }

// kernel: temporal_conv_block.2
= control target key start
LH: loop header
LB: loop body
LE: loop exit
PB: predicated region body
PF: predicated region fallthrough
CT: control target
= control target key end

     0   :  { %10 = vsyncpa [#allocation3], 0  ;;  %s2410_s0 = inlined_call_operand.hbm [shape: f32[8,64,128], index: 0, kind: input, shape index: {}]   ;;  %s2411_s1 = inlined_call_operand.vmem [shape: f32[64,96], index: 1, kind: input, shape index: {}]   ;;  %s2412_s2 = inlined_call_operand.vmem [shape: f32[1,32], index: 2, kind: input, shape index: {}]   ;;  %s2413_s3 = inlined_call_operand.vmem [shape: f32[8,32,128], index: 3, kind: output, shape index: {0}]   ;;  %s2414_s4 = inlined_call_operand.vmem [shape: f32[4,32,2], index: 4, kind: output, shape index: {1}]  }
   0x1   :  { %12 = vsyncpa [#allocation3 + $0x1], 0  ;;  %s1770_s15 = smov 0   ;;  %s1772_s16 = smov 0  }
   0x2   :  { %s1774_s17 = smov 0   ;;  %s1776_s18 = smov 0  }
   0x3 LB: > { %s1789_s19 = sadd.s32 4294967295, %s1738_s18   ;;  %s1792_s20 = sadd.s32 1, %s1738_s18   ;;  %s1738_s18 = sphi %s1776_s18, %s2421_s18   ;;  %s1734_s17 = sphi %s1774_s17, %s2420_s17   ;;  %s1730_s16 = sphi %s1772_s16, %s2419_s16   ;;  %s1726_s15 = sphi %s1770_s15, %s2418_s15  }
   0x4   : > { %s22_s21 = ssub.s32 %s1738_s18, %s1792_s20  ;;  %s25_s22 = sadd.s32 1, %s1734_s17 }
   0x5   : > { %p23_p0 = scmp.eq.s32.totalorder %s22_s21, 0  ;;  %p32_p1 = scmp.ne.s32.totalorder %s1734_s17, %s1730_s16 }
   0x6   : > { %p33_p2 = scmp.eq.s32.totalorder %s1738_s18, 0  ;;  %p38_p3 = scmp.ne.s32.totalorder %s1730_s16, %s1726_s15 }
   0x7   : > { %s1802_s23 = scalar_select %p23_p0, %s1734_s17, %s25_s22  }
   0x8   : > { %p34_p4 = por %p33_p2, %p32_p1  ;;  %p39_p5 = scmp.eq.s32.totalorder %s1789_s19, 0 }
   0x9   : > { %p1636_p6 = scmp.lt.s32.totalorder %s1738_s18, 4  ;;  %s162_s25 = sand.u32 1, %s1734_s17  }
   0xa   : > { %p1806_p7 = por %p39_p5, %p38_p3  ;;  %s1452_s26 = sshll.u32 %s162_s25, 7 }
   0xb   : > { %s1499_s27 = sshll.u32 %s1738_s18, 11  ;;  %s166_s5 = scalar_lea.vmem [#allocation2], %s1452_s26 }
   0xc   : > { %s1815_s30 = scalar_lea.hbm %s2410_s0, %s1499_s27  ;;  %s174_s6 = sshll.u32 %s166_s5, 4  ;;  %s1817_s6 = int_to_ptr.vmem [resolvable:$true] %s174_s6 }
   0xd   : > { %p1819_p8 = pnand %p1636_p6, %p34_p4  ;;  %s1824_s8 = scalar_lea.sflag [#allocation3], %s162_s25 }
   0xe   : > { %s1674_s9 = scalar_lea.hbm %s1815_s30, 2048  ;;  %s1679_s12 = scalar_lea.hbm %s2410_s0, 8192 }
   0xf   : > { %p1675_p10 = scmp.ne.s32.totalorder %s1815_s30, %s1674_s9  ;;  %p1676_p11 = pneg %p1819_p8 }
  0x10   : > { %p1680_p0 = scmp.lt.u32.totalorder %s1815_s30, %s2410_s0  ;;  %p1681_p1 = scmp.lt.u32.totalorder %s1679_s12, %s1674_s9 }
  0x11   : > { %p1677_p12 = pnand %p1676_p11, %p1675_p10  ;;  %p1683_p3 = scmp.lt.u32.totalorder %s1674_s9, %s1815_s30 }
  0x12   : > { %p1682_p2 = por %p1681_p1, %p1680_p0 }
  0x13   : > { %p1678_p13 = pneg %p1677_p12 }
  0x14   : > { %p1684_p4 = por %p1683_p3, %p1682_p2 }
  0x16   : > { %p1685_p5 = pnand %p1684_p4, %p1678_p13 }
  0x18   : > { %1688 = shalt.err (!%p1685_p5)
}
  0x19   : > { %s1689_s15 = scalar_lea.vmem %s1817_s6, 2048  ;;  %s1740_s21 = smov [#allocation2]  }
  0x1a   : > { %p1690_p6 = scmp.ne.s32.totalorder %s1817_s6, %s1689_s15  ;;  %s1694_s22 = sshll.u32 %s1740_s21, 4  ;;  %s1695_s22 = int_to_ptr.vmem [resolvable:$false] %s1694_s22 }
  0x1b   : > { %s1696_s25 = scalar_lea.vmem %s1695_s22, 4096  ;;  %p1697_p9 = scmp.lt.s32.totalorder %s1817_s6, %s1695_s22 }
  0x1c   : > { %p1692_p10 = pnand %p1690_p6, %p1676_p11  ;;  %p1698_p0 = scmp.lt.s32.totalorder %s1696_s25, %s1689_s15 }
  0x1e   : > { %p1693_p12 = pneg %p1692_p10  ;;  %p1699_p1 = por %p1698_p0, %p1697_p9 }
  0x20   : > { %p1700_p2 = pnand %p1699_p1, %p1693_p12 }
  0x22   : > { %1703 = shalt.err (!%p1700_p2)
}
  0x23   : > { %s1741_s26 = smov 128   ;;  %s1742_s27 = smov 8  }
  0x24   : > { %1635 = dma.hbm_to_vmem [thread:$0]  (!%p1819_p8), %s1815_s30, 2048, %s1817_s6, %s1824_s8, %s1741_s26, %s1741_s26, %s1742_s27  }
  0x25   : > { %p182_p11 = scmp.lt.s32.totalorder %s1738_s18, 5  ;;  %p2417_p13 = scmp.ge.s32.totalorder %s1738_s18, 1 }
  0x27   : > { %p183_p3 = pnand %p2417_p13, %p182_p11 }
  0x28   : > { %s188_s28 = sand.u32 (!%p183_p3), 1, %s1730_s16  }
  0x29   : > { %186 = sbr.rel (%p183_p3) target bundleno = 896 (0x380), region = 32  ;;  %s1457_s29 = sshll.u32 (!%p183_p3), %s188_s28, 7 }
  0x2a   : > { %s189_s5 = scalar_lea.sflag (!%p183_p3), [#allocation3], %s188_s28  ;;  %s1856_s9 = scalar_lea.vmem (!%p183_p3), [#allocation2], %s1457_s29 }
  0x30   : > { %1721 = dma.done.wait (%p1806_p7), %s189_s5, 2048  }
  0x31   : > { %1723 = vsyncadd (%p1806_p7), %s189_s5, 4294965248  ;;  %v244_v0 = vld [vmem:[%s1856_s9 + $0x40] sm:$0xff]  ;;  %v245_v2 = vld [vmem:[%s1856_s9 + $0x48] sm:$0xff]  ;;  %vm324_vm0 = vcmask 523264   ;;  %v646_v60 = vlaneseq  ;;  %s1743_s27 = smov 64   ;;  %s1744_s28 = smov 96  }
  0x32   : > { %v236_v1 = vld [vmem:[%s1856_s9] sm:$0xff]  ;;  %284 = vxpose.xlu1.b32.start [1/8] (short) %v244_v0, 128  ;;  %v237_v3 = vld [vmem:[%s1856_s9 + $0x8] sm:$0xff]  ;;  %v246_v4 = vld [vmem:[%s1856_s9 + $0x50] sm:$0xff]  ;;  %p231_p8 = scmp.lt.s32.totalorder %s1789_s19, 3  ;;  %vm1336_vm5 = vcmask 7168   ;;  %vm1341_vm6 = vcmask 15360  }
  0x33   : > { %252 = vxpose.xlu0.b32.start [1/8] (short) %v236_v1, 128  ;;  %v316_v5 = vld [vmem:[%s2411_s1] sm:$0xff]  ;;  %v317_v6 = vld [vmem:[%s2411_s1 + $0x8] sm:$0xff]  ;;  %v238_v7 = vld [vmem:[%s1856_s9 + $0x10] sm:$0xff]  ;;  %v1934_v61 = vshrl.u32 %v646_v60, 7 }
  0x34   : > { %v1606_v8 = vpack.c.bf16 %v317_v6, %v316_v5  ;;  %v318_v9 = vld [vmem:[%s2411_s1 + $0x10] sm:$0xff]  ;;  %v319_v10 = vld [vmem:[%s2411_s1 + $0x18] sm:$0xff]  ;;  %v320_v12 = vld [vmem:[%s2411_s1 + $0x20] sm:$0xff] }
  0x35   : > { %v1610_v11 = vpack.c.bf16 %v319_v10, %v318_v9  ;;  %v321_v13 = vld [vmem:[%s2411_s1 + $0x28] sm:$0xff]  ;;  %v247_v14 = vld [vmem:[%s1856_s9 + $0x58] sm:$0xff]  ;;  %v322_v17 = vld [vmem:[%s2411_s1 + $0x30] sm:$0xff]  ;;  %vm711_vm1 = vcmp.lt.s32.totalorder %v1934_v61, 1  ;;  %vm663_vm2 = vcmp.eq.s32.totalorder %v1934_v61, 0  ;;  %vm952_vm3 = vcmp.lt.s32.totalorder %v1934_v61, 7 }
  0x36   : > { %285 = vxpose.xlu1.b32.cont [2/8] (short) %v245_v2, 128  ;;  %1607 = vmatprep.subr.bf16.mxu0 %v1606_v8  ;;  %v239_v15 = vld [vmem:[%s1856_s9 + $0x18] sm:$0xff]  ;;  %v1614_v16 = vpack.c.bf16 %v321_v13, %v320_v12  ;;  %v248_v19 = vld [vmem:[%s1856_s9 + $0x60] sm:$0xff]  ;;  %v249_v22 = vld [vmem:[%s1856_s9 + $0x68] sm:$0xff] }
  0x37   : > { %253 = vxpose.xlu0.b32.cont [2/8] (short) %v237_v3, 128  ;;  %1622 = vmatprep.subr.bf16.mxu1 %v1606_v8  ;;  %v323_v18 = vld [vmem:[%s2411_s1 + $0x38] sm:$0xff]  ;;  %v240_v20 = vld [vmem:[%s1856_s9 + $0x20] sm:$0xff]  ;;  %v241_v23 = vld [vmem:[%s1856_s9 + $0x28] sm:$0xff] }
  0x38   : > { %1609 = vmatpush3.bf16.msra.mxu0 %v1606_v8  ;;  %1626 = vmatpush3.bf16.msra.mxu1 %v1606_v8  ;;  %v1618_v21 = vpack.c.bf16 %v323_v18, %v322_v17  ;;  %v250_v24 = vld [vmem:[%s1856_s9 + $0x70] sm:$0xff]  ;;  %v251_v26 = vld [vmem:[%s1856_s9 + $0x78] sm:$0xff] }
  0x39   : > { %1611 = vmatprep.subr.bf16.mxu0 %v1610_v11  ;;  %1623 = vmatprep.subr.bf16.mxu1 %v1610_v11  ;;  %v242_v25 = vld [vmem:[%s1856_s9 + $0x30] sm:$0xff]  ;;  %v243_v27 = vld [vmem:[%s1856_s9 + $0x38] sm:$0xff]  ;;  %s1458_s9 = sshll.u32 %s1789_s19, 1  ;;  %s2425_s19 = smov (!%p231_p8, %s1789_s19), 3 }
  0x3a   : > { %286 = vxpose.xlu1.b32.cont [3/8] (short) %v246_v4, 128  ;;  %p225_p7 = scmp.lt.s32.totalorder %s1458_s9, 7  ;;  %s1501_s7 = sshll.u32 %s2425_s19, 5 }
  0x3b   : > { %254 = vxpose.xlu0.b32.cont [3/8] (short) %v238_v7, 128  ;;  %s235_s11 = scalar_lea.vmem %s2414_s4, %s1501_s7 }
  0x3c   : > { %1613 = vmatpush3.bf16.msra.mxu0 %v1610_v11  ;;  %1627 = vmatpush3.bf16.msra.mxu1 %v1610_v11  ;;  %s2423_s9 = smov (!%p225_p7, %s1458_s9), 7 }
  0x3d   : > { %1615 = vmatprep.subr.bf16.mxu0 %v1614_v16  ;;  %1624 = vmatprep.subr.bf16.mxu1 %v1614_v16  ;;  %s1500_s18 = sshll.u32 %s2423_s9, 5 }
  0x3e   : > { %287 = vxpose.xlu1.b32.cont [4/8] (short) %v247_v14, 128  ;;  %s229_s6 = scalar_lea.vmem %s2413_s3, %s1500_s18 }
  0x3f   : > { %255 = vxpose.xlu0.b32.cont [4/8] (short) %v239_v15, 128 }
  0x40   : > { %1617 = vmatpush3.bf16.msra.mxu0 %v1614_v16  ;;  %1628 = vmatpush3.bf16.msra.mxu1 %v1614_v16 }
  0x41   : > { %1619 = vmatprep.subr.bf16.mxu0 %v1618_v21  ;;  %1625 = vmatprep.subr.bf16.mxu1 %v1618_v21 }
  0x42   : > { %288 = vxpose.xlu1.b32.cont [5/8] (short) %v248_v19, 128 }
  0x43   : > { %256 = vxpose.xlu0.b32.cont [5/8] (short) %v240_v20, 128 }
  0x44   : > { %1621 = vmatpush3.bf16.msra.mxu0 %v1618_v21  ;;  %1629 = vmatpush3.bf16.msra.mxu1 %v1618_v21 }
  0x46   : > { %289 = vxpose.xlu1.b32.cont [6/8] (short) %v249_v22, 128 }
  0x47   : > { %257 = vxpose.xlu0.b32.cont [6/8] (short) %v241_v23, 128 }
  0x4a   : > { %290 = vxpose.xlu1.b32.cont [7/8] (short) %v250_v24, 128 }
  0x4b   : > { %258 = vxpose.xlu0.b32.cont [7/8] (short) %v242_v25, 128 }
  0x4e   : > { %291 = vxpose.xlu1.b32.end [8/8] (short) %v251_v26, 128 }
  0x4f   : > { %259 = vxpose.xlu0.b32.end [8/8] (short) %v243_v27, 128 }
  0xb2   : > { %v300_v28 = vpop.trf.xlu1 }
  0xb3   : > { %v268_v29 = vpop.trf.xlu0  ;;  %1582 = vmatprep.mubr.msk.f32.mxu1 %vm324_vm0, %v300_v28 }
  0xb4   : > { %1558 = vmatprep.mubr.msk.f32.mxu0 %vm324_vm0, %v268_v29 }
  0xb6   : > { %v301_v30 = vpop.trf.xlu1 }
  0xb7   : > { %v269_v31 = vpop.trf.xlu0  ;;  %1583 = vmatmul.mubr.msk.f32.vlgmr.msra.gmra.mrb[0].mxu1 %vm324_vm0, %v301_v30 }
  0xb8   : > { %1559 = vmatmul.mubr.msk.f32.vlgmr.msra.gmra.mrb[0].mxu0 %vm324_vm0, %v269_v31 }
  0xba   : > { %v302_v32 = vpop.trf.xlu1 }
  0xbb   : > { %v270_v33 = vpop.trf.xlu0  ;;  %1585 = vmatprep.mubr.msk.f32.mxu1 %vm324_vm0, %v302_v32 }
  0xbc   : > { %1561 = vmatprep.mubr.msk.f32.mxu0 %vm324_vm0, %v270_v33 }
  0xbe   : > { %v303_v34 = vpop.trf.xlu1 }
  0xbf   : > { %v271_v35 = vpop.trf.xlu0  ;;  %1586 = vmatmul.mubr.msk.f32.gmra.mrb[2].mxu1 %vm324_vm0, %v303_v34 }
  0xc0   : > { %1562 = vmatmul.mubr.msk.f32.gmra.mrb[2].mxu0 %vm324_vm0, %v271_v35 }
  0xc2   : > { %v304_v36 = vpop.trf.xlu1 }
  0xc3   : > { %v272_v37 = vpop.trf.xlu0  ;;  %1588 = vmatprep.mubr.msk.f32.mxu1 %vm324_vm0, %v304_v36 }
  0xc4   : > { %1564 = vmatprep.mubr.msk.f32.mxu0 %vm324_vm0, %v272_v37 }
  0xc6   : > { %v305_v38 = vpop.trf.xlu1 }
  0xc7   : > { %v273_v39 = vpop.trf.xlu0  ;;  %1589 = vmatmul.mubr.msk.f32.gmra.mrb[4].mxu1 %vm324_vm0, %v305_v38 }
  0xc8   : > { %1565 = vmatmul.mubr.msk.f32.gmra.mrb[4].mxu0 %vm324_vm0, %v273_v39 }
  0xca   : > { %v306_v40 = vpop.trf.xlu1 }
  0xcb   : > { %v274_v41 = vpop.trf.xlu0  ;;  %1591 = vmatprep.mubr.msk.f32.mxu1 %vm324_vm0, %v306_v40 }
  0xcc   : > { %1567 = vmatprep.mubr.msk.f32.mxu0 %vm324_vm0, %v274_v41 }
  0xce   : > { %v307_v42 = vpop.trf.xlu1 }
  0xcf   : > { %v275_v43 = vpop.trf.xlu0  ;;  %1592 = vmatmul.mubr.msk.f32.gmra.mrb[6].mxu1 %vm324_vm0, %v307_v42 }
  0xd0   : > { %1568 = vmatmul.mubr.msk.f32.gmra.mrb[6].mxu0 %vm324_vm0, %v275_v43 }
  0xd2   : > { %v308_v44 = vpop.trf.xlu1 }
  0xd3   : > { %v276_v45 = vpop.trf.xlu0  ;;  %1594 = vmatprep.mubr.msk.f32.mxu1 %vm324_vm0, %v308_v44 }
  0xd4   : > { %1570 = vmatprep.mubr.msk.f32.mxu0 %vm324_vm0, %v276_v45 }
  0xd6   : > { %v309_v46 = vpop.trf.xlu1 }
  0xd7   : > { %v277_v47 = vpop.trf.xlu0  ;;  %1595 = vmatmul.mubr.msk.f32.gmra.mrb[8].mxu1 %vm324_vm0, %v309_v46 }
  0xd8   : > { %1571 = vmatmul.mubr.msk.f32.gmra.mrb[8].mxu0 %vm324_vm0, %v277_v47 }
  0xda   : > { %v310_v48 = vpop.trf.xlu1 }
  0xdb   : > { %v278_v49 = vpop.trf.xlu0  ;;  %1597 = vmatprep.mubr.msk.f32.mxu1 %vm324_vm0, %v310_v48 }
  0xdc   : > { %1573 = vmatprep.mubr.msk.f32.mxu0 %vm324_vm0, %v278_v49 }
  0xde   : > { %v311_v50 = vpop.trf.xlu1 }
  0xdf   : > { %v279_v51 = vpop.trf.xlu0  ;;  %1598 = vmatmul.mubr.msk.f32.gmra.mrb[10].mxu1 %vm324_vm0, %v311_v50 }
  0xe0   : > { %1574 = vmatmul.mubr.msk.f32.gmra.mrb[10].mxu0 %vm324_vm0, %v279_v51 }
  0xe2   : > { %v312_v52 = vpop.trf.xlu1 }
  0xe3   : > { %v280_v53 = vpop.trf.xlu0  ;;  %1600 = vmatprep.mubr.msk.f32.mxu1 %vm324_vm0, %v312_v52 }
  0xe4   : > { %1576 = vmatprep.mubr.msk.f32.mxu0 %vm324_vm0, %v280_v53 }
  0xe6   : > { %v313_v54 = vpop.trf.xlu1 }
  0xe7   : > { %v281_v55 = vpop.trf.xlu0  ;;  %1601 = vmatmul.mubr.msk.f32.gmra.mrb[12].mxu1 %vm324_vm0, %v313_v54 }
  0xe8   : > { %1577 = vmatmul.mubr.msk.f32.gmra.mrb[12].mxu0 %vm324_vm0, %v281_v55 }
  0xea   : > { %v314_v56 = vpop.trf.xlu1 }
  0xeb   : > { %v282_v57 = vpop.trf.xlu0  ;;  %1603 = vmatprep.mubr.msk.f32.mxu1 %vm324_vm0, %v314_v56 }
  0xec   : > { %1579 = vmatprep.mubr.msk.f32.mxu0 %vm324_vm0, %v282_v57 }
  0xee   : > { %v315_v58 = vpop.trf.xlu1 }
  0xef   : > { %v283_v59 = vpop.trf.xlu0  ;;  %1604 = vmatmul.mubr.msk.f32.gmra.mrb[14].mxu1 %vm324_vm0, %v315_v58 }
  0xf0   : > { %1580 = vmatmul.mubr.msk.f32.gmra.mrb[14].mxu0 %vm324_vm0, %v283_v59 }
 0x18a   : > { %v1584_v63 = vpop.f32.mrb[0].mxu1 }
 0x18b   : > { %v1560_v62 = vpop.f32.mrb[0].mxu0  ;;  %v682_v1 = vrot.slane %v1584_v63, 7  ;;  %858 = vrot.lane.b32.xlu0 %v1584_v63, %s1743_s27  ;;  %v1940_v3 = vpop.f32.mrb[1].mxu1 }
 0x18c   : > { %v681_v0 = vrot.slane %v1560_v62, 7  ;;  %826 = vrot.lane.b32.xlu1 %v1560_v62, %s1743_s27  ;;  %v1938_v2 = vpop.f32.mrb[1].mxu0  ;;  %v680_v5 = vrot.slane %v1940_v3, 7 }
 0x18d   : > { %v679_v4 = vrot.slane %v1938_v2, 7 }
 0x18e   : > { %v1949_v6 = vsel %vm711_vm1, %v680_v5, %v682_v1 }
 0x18f   : > { %v1955_v7 = vsel %vm711_vm1, %v679_v4, %v681_v0  ;;  %1019 = vrot.lane.b32.xlu0 %v1560_v62, %s1744_s28 }
 0x190   : > { %1051 = vrot.lane.b32.xlu1 %v1584_v63, %s1744_s28 }
 0x192   : > { %v1587_v9 = vpop.f32.mrb[2].mxu1 }
 0x193   : > { %v1563_v8 = vpop.f32.mrb[2].mxu0  ;;  %v686_v11 = vrot.slane %v1587_v9, 7  ;;  %v577_v12 = vpop.f32.mrb[3].mxu1  ;;  %824 = vrot.lane.b32.xlu0 %v1938_v2, %s1743_s27 }
 0x194   : > { %v685_v10 = vrot.slane %v1563_v8, 7  ;;  %856 = vrot.lane.b32.xlu1 %v1940_v3, %s1743_s27  ;;  %v497_v13 = vpop.f32.mrb[3].mxu0  ;;  %v684_v14 = vrot.slane %v577_v12, 7 }
 0x195   : > { %v683_v15 = vrot.slane %v497_v13, 7 }
 0x196   : > { %v1965_v16 = vsel %vm711_vm1, %v684_v14, %v686_v11  ;;  %v1977_v19 = vsel %vm711_vm1, %v682_v1, %v684_v14 }
 0x197   : > { %v1969_v17 = vsel %vm711_vm1, %v683_v15, %v685_v10  ;;  %v1973_v18 = vsel %vm711_vm1, %v681_v0, %v683_v15  ;;  %1017 = vrot.lane.b32.xlu0 %v1938_v2, %s1744_s28 }
 0x198   : > { %1049 = vrot.lane.b32.xlu1 %v1940_v3, %s1744_s28 }
 0x19a   : > { %v1590_v21 = vpop.f32.mrb[4].mxu1 }
 0x19b   : > { %v1566_v20 = vpop.f32.mrb[4].mxu0  ;;  %862 = vrot.lane.b32.xlu0 %v1587_v9, %s1743_s27  ;;  %v690_v24 = vrot.slane %v1590_v21, 7  ;;  %v587_v25 = vpop.f32.mrb[5].mxu1 }
 0x19c   : > { %v689_v22 = vrot.slane %v1566_v20, 7  ;;  %830 = vrot.lane.b32.xlu1 %v1563_v8, %s1743_s27  ;;  %v507_v23 = vpop.f32.mrb[5].mxu0  ;;  %v688_v27 = vrot.slane %v587_v25, 7 }
 0x19d   : > { %v687_v26 = vrot.slane %v507_v23, 7 }
 0x19e   : > { %v1987_v28 = vsel %vm711_vm1, %v688_v27, %v690_v24  ;;  %v1999_v31 = vsel %vm711_vm1, %v686_v11, %v688_v27 }
 0x19f   : > { %v1991_v29 = vsel %vm711_vm1, %v687_v26, %v689_v22  ;;  %v1995_v30 = vsel %vm711_vm1, %v685_v10, %v687_v26  ;;  %1023 = vrot.lane.b32.xlu0 %v1563_v8, %s1744_s28 }
 0x1a0   : > { %1055 = vrot.lane.b32.xlu1 %v1587_v9, %s1744_s28 }
 0x1a2   : > { %v2003_v32 = vpop.f32.mrb[6].mxu1 }
 0x1a3   : > { %v1569_v33 = vpop.f32.mrb[6].mxu0  ;;  %1021 = vrot.lane.b32.xlu0 %v497_v13, %s1744_s28  ;;  %v694_v34 = vrot.slane %v2003_v32, 7  ;;  %v2008_v35 = vpop.f32.mrb[7].mxu1 }
 0x1a4   : > { %828 = vrot.lane.b32.xlu1 %v497_v13, %s1743_s27  ;;  %v693_v36 = vrot.slane %v1569_v33, 7  ;;  %v2010_v37 = vpop.f32.mrb[7].mxu0  ;;  %v692_v38 = vrot.slane %v2008_v35, 7 }
 0x1a5   : > { %v691_v39 = vrot.slane %v2010_v37, 7 }
 0x1a6   : > { %v2016_v40 = vsel %vm711_vm1, %v692_v38, %v694_v34  ;;  %v2024_v42 = vsel %vm711_vm1, %v690_v24, %v692_v38 }
 0x1a7   : > { %v2020_v41 = vsel %vm711_vm1, %v691_v39, %v693_v36  ;;  %v2028_v43 = vsel %vm711_vm1, %v689_v22, %v691_v39  ;;  %834 = vrot.lane.b32.xlu0 %v1566_v20, %s1743_s27 }
 0x1a8   : > { %860 = vrot.lane.b32.xlu1 %v577_v12, %s1743_s27 }
 0x1aa   : > { %v2034_v45 = vpop.f32.mrb[8].mxu1 }
 0x1ab   : > { %v2032_v44 = vpop.f32.mrb[8].mxu0  ;;  %866 = vrot.lane.b32.xlu0 %v1590_v21, %s1743_s27  ;;  %v698_v47 = vrot.slane %v2034_v45, 7  ;;  %v2042_v49 = vpop.f32.mrb[9].mxu1 }
 0x1ac   : > { %1053 = vrot.lane.b32.xlu1 %v577_v12, %s1744_s28  ;;  %v697_v46 = vrot.slane %v2032_v44, 7  ;;  %v2040_v48 = vpop.f32.mrb[9].mxu0  ;;  %v696_v51 = vrot.slane %v2042_v49, 7 }
 0x1ad   : > { %v695_v50 = vrot.slane %v2040_v48, 7 }
 0x1ae   : > { %v2048_v52 = vsel %vm711_vm1, %v696_v51, %v698_v47  ;;  %v2056_v54 = vsel %vm711_vm1, %v694_v34, %v696_v51 }
 0x1af   : > { %v2052_v53 = vsel %vm711_vm1, %v695_v50, %v697_v46  ;;  %v2060_v55 = vsel %vm711_vm1, %v693_v36, %v695_v50  ;;  %1027 = vrot.lane.b32.xlu0 %v1566_v20, %s1744_s28 }
 0x1b0   : > { %1059 = vrot.lane.b32.xlu1 %v1590_v21, %s1744_s28 }
 0x1b2   : > { %v1599_v57 = vpop.f32.mrb[10].mxu1 }
 0x1b3   : > { %v1575_v56 = vpop.f32.mrb[10].mxu0  ;;  %1025 = vrot.lane.b32.xlu0 %v507_v23, %s1744_s28  ;;  %v702_v59 = vrot.slane %v1599_v57, 7  ;;  %v617_v60 = vpop.f32.mrb[11].mxu1 }
 0x1b4   : > { %832 = vrot.lane.b32.xlu1 %v507_v23, %s1743_s27  ;;  %v701_v58 = vrot.slane %v1575_v56, 7  ;;  %v537_v62 = vpop.f32.mrb[11].mxu0  ;;  %v700_v63 = vrot.slane %v617_v60, 7 }
 0x1b5   : > { %v699_v0 = vrot.slane %v537_v62, 7 }
 0x1b6   : > { %v2068_v1 = vsel %vm711_vm1, %v700_v63, %v702_v59  ;;  %v2076_v9 = vsel %vm711_vm1, %v698_v47, %v700_v63 }
 0x1b7   : > { %v2072_v8 = vsel %vm711_vm1, %v699_v0, %v701_v58  ;;  %v2080_v10 = vsel %vm711_vm1, %v697_v46, %v699_v0  ;;  %838 = vrot.lane.b32.xlu0 %v1569_v33, %s1743_s27 }
 0x1b8   : > { %864 = vrot.lane.b32.xlu1 %v587_v25, %s1743_s27 }
 0x1ba   : > { %v1602_v12 = vpop.f32.mrb[12].mxu1 }
 0x1bb   : > { %v1578_v11 = vpop.f32.mrb[12].mxu0  ;;  %870 = vrot.lane.b32.xlu0 %v2003_v32, %s1743_s27  ;;  %v706_v14 = vrot.slane %v1602_v12, 7  ;;  %v627_v20 = vpop.f32.mrb[13].mxu1 }
 0x1bc   : > { %1057 = vrot.lane.b32.xlu1 %v587_v25, %s1744_s28  ;;  %v705_v13 = vrot.slane %v1578_v11, 7  ;;  %v547_v15 = vpop.f32.mrb[13].mxu0  ;;  %v704_v22 = vrot.slane %v627_v20, 7 }
 0x1bd   : > { %v703_v21 = vrot.slane %v547_v15, 7 }
 0x1be   : > { %v2089_v23 = vsel %vm711_vm1, %v704_v22, %v706_v14  ;;  %v2097_v25 = vsel %vm711_vm1, %v702_v59, %v704_v22 }
 0x1bf   : > { %v2093_v24 = vsel %vm711_vm1, %v703_v21, %v705_v13  ;;  %v2101_v26 = vsel %vm711_vm1, %v701_v58, %v703_v21  ;;  %1031 = vrot.lane.b32.xlu0 %v1569_v33, %s1744_s28 }
 0x1c0   : > { %1063 = vrot.lane.b32.xlu1 %v2003_v32, %s1744_s28 }
 0x1c2   : > { %v1605_v34 = vpop.f32.mrb[14].mxu1 }
 0x1c3   : > { %v1581_v27 = vpop.f32.mrb[14].mxu0  ;;  %v710_v38 = vrot.slane %v1605_v34, 7  ;;  %1061 = vrot.lane.b32.xlu0 %v2008_v35, %s1744_s28  ;;  %v637_v39 = vpop.f32.mrb[15].mxu1 }
 0x1c4   : > { %v709_v36 = vrot.slane %v1581_v27, 7  ;;  %836 = vrot.lane.b32.xlu1 %v2010_v37, %s1743_s27  ;;  %v557_v46 = vpop.f32.mrb[15].mxu0  ;;  %v708_v47 = vrot.slane %v637_v39, 7 }
 0x1c5   : > { %v707_v50 = vrot.slane %v557_v46, 7  ;;  %v743_v32 = vsel %vm711_vm1, %v710_v38, %v680_v5 }
 0x1c6   : > { %v2118_v33 = vsel %vm711_vm1, %v709_v36, %v679_v4  ;;  %v2126_v58 = vsel %vm711_vm1, %v708_v47, %v710_v38  ;;  %v2134_v2 = vsel %vm711_vm1, %v706_v14, %v708_v47 }
 0x1c7   : > { %v2122_v51 = vsel %vm711_vm1, %v707_v50, %v709_v36  ;;  %842 = vrot.lane.b32.xlu0 %v2032_v44, %s1743_s27  ;;  %v2138_v3 = vsel %vm711_vm1, %v705_v13, %v707_v50 }
 0x1c8   : > { %868 = vrot.lane.b32.xlu1 %v2008_v35, %s1743_s27 }
 0x1cb   : > { %874 = vrot.lane.b32.xlu0 %v2034_v45, %s1743_s27 }
 0x1cc   : > { %1029 = vrot.lane.b32.xlu1 %v2010_v37, %s1744_s28 }
 0x1cf   : > { %1035 = vrot.lane.b32.xlu0 %v2032_v44, %s1744_s28 }
 0x1d0   : > { %1067 = vrot.lane.b32.xlu1 %v2034_v45, %s1744_s28 }
 0x1d3   : > { %1065 = vrot.lane.b32.xlu0 %v2042_v49, %s1744_s28 }
 0x1d4   : > { %840 = vrot.lane.b32.xlu1 %v2040_v48, %s1743_s27 }
 0x1d7   : > { %846 = vrot.lane.b32.xlu0 %v1575_v56, %s1743_s27 }
 0x1d8   : > { %872 = vrot.lane.b32.xlu1 %v2042_v49, %s1743_s27 }
 0x1db   : > { %878 = vrot.lane.b32.xlu0 %v1599_v57, %s1743_s27 }
 0x1dc   : > { %1033 = vrot.lane.b32.xlu1 %v2040_v48, %s1744_s28 }
 0x1df   : > { %1039 = vrot.lane.b32.xlu0 %v1575_v56, %s1744_s28 }
 0x1e0   : > { %1071 = vrot.lane.b32.xlu1 %v1599_v57, %s1744_s28 }
 0x1e3   : > { %1069 = vrot.lane.b32.xlu0 %v617_v60, %s1744_s28 }
 0x1e4   : > { %844 = vrot.lane.b32.xlu1 %v537_v62, %s1743_s27 }
 0x1e7   : > { %850 = vrot.lane.b32.xlu0 %v1578_v11, %s1743_s27 }
 0x1e8   : > { %876 = vrot.lane.b32.xlu1 %v617_v60, %s1743_s27 }
 0x1eb   : > { %882 = vrot.lane.b32.xlu0 %v1602_v12, %s1743_s27 }
 0x1ec   : > { %1037 = vrot.lane.b32.xlu1 %v537_v62, %s1744_s28 }
 0x1ef   : > { %1043 = vrot.lane.b32.xlu0 %v1578_v11, %s1744_s28  ;;  %v760_v11 = vsel %vm663_vm2, 0.0, %v743_v32 }
 0x1f0   : > { %1075 = vrot.lane.b32.xlu1 %v1602_v12, %s1744_s28 }
 0x1f3   : > { %1073 = vrot.lane.b32.xlu0 %v627_v20, %s1744_s28 }
 0x1f4   : > { %848 = vrot.lane.b32.xlu1 %v547_v15, %s1743_s27 }
 0x1f7   : > { %854 = vrot.lane.b32.xlu0 %v1581_v27, %s1743_s27 }
 0x1f8   : > { %880 = vrot.lane.b32.xlu1 %v627_v20, %s1743_s27 }
 0x1fb   : > { %886 = vrot.lane.b32.xlu0 %v1605_v34, %s1743_s27 }
 0x1fc   : > { %1041 = vrot.lane.b32.xlu1 %v547_v15, %s1744_s28 }
 0x1fd   : > { %v859_v5 = vpop.permute.xlu0 %858 }
 0x1fe   : > { %v2174_v4 = vpop.permute.xlu1 %826  ;;  %v923_v13 = vrot.slane %v859_v5, 1 }
 0x1ff   : > { %1079 = vrot.lane.b32.xlu0 %v1605_v34, %s1744_s28 }
 0x200   : > { %1047 = vrot.lane.b32.xlu1 %v1581_v27, %s1744_s28  ;;  %v2208_v27 = vld [vmem:[%s2412_s2] ss:$0 sm:$0xff] }
 0x201   : > { %v2178_v37 = vpop.permute.xlu0 %1019 }
 0x202   : > { %v1052_v35 = vpop.permute.xlu1 %1051 }
 0x203   : > { %1077 = vrot.lane.b32.xlu0 %v637_v39, %s1744_s28  ;;  %v1130_v36 = vadd.f32 %v1052_v35, %v1949_v6 }
 0x204   : > { %852 = vrot.lane.b32.xlu1 %v557_v46, %s1743_s27 }
 0x205   : > { %v2184_v45 = vpop.permute.xlu0 %824 }
 0x206   : > { %v2182_v44 = vpop.permute.xlu1 %856 }
 0x207   : > { %v921_v0 = vrot.slane %v2182_v44, 1 }
 0x208   : > { %884 = vrot.lane.b32.xlu1 %v637_v39, %s1743_s27 }
 0x209   : > { %v1018_v49 = vpop.permute.xlu0 %1017  ;;  %v982_v20 = vsel %vm952_vm3, %v921_v0, %v923_v13 }
 0x20a   : > { %v1050_v48 = vpop.permute.xlu1 %1049 }
 0x20b   : > { %v1129_v12 = vadd.f32 %v1050_v48, %v760_v11 }
 0x20c   : > { %1045 = vrot.lane.b32.xlu1 %v557_v46, %s1744_s28 }
 0x20d   : > { %v863_v57 = vpop.permute.xlu0 %862  ;;  %v1161_v22 = vadd.f32 %v1129_v12, %v982_v20  ;;  %v920_v20 = vrot.slane %v2184_v45, 1 }
 0x20e   : > { %v2188_v56 = vpop.permute.xlu1 %830  ;;  %v927_v32 = vrot.slane %v863_v57, 1 }
 0x20f   : > { %v1200_v46 = vadd.f32 %v2208_v27, %v1161_v22 }
 0x211   : > { %v2190_v60 = vpop.permute.xlu0 %1023 }
 0x212   : > { %v1056_v59 = vpop.permute.xlu1 %1055 }
 0x215   : > { %v1022_v63 = vpop.permute.xlu0 %1021 }
 0x216   : > { %v2193_v62 = vpop.permute.xlu1 %828 }
 0x219   : > { %v2199_v15 = vpop.permute.xlu0 %834 }
 0x21a   : > { %v861_v14 = vpop.permute.xlu1 %860 }
 0x21b   : > { %v925_v21 = vrot.slane %v861_v14, 1 }
 0x21d   : > { %v980_v34 = vsel %vm952_vm3, %v923_v13, %v925_v21  ;;  %v2213_v39 = vpop.permute.xlu0 %866  ;;  %v978_v11 = vsel %vm952_vm3, %v925_v21, %v927_v32 }
 0x21e   : > { %v1054_v38 = vpop.permute.xlu1 %1053  ;;  %v1162_v47 = vadd.f32 %v1130_v36, %v980_v34  ;;  %v922_v36 = vrot.slane %v2174_v4, 1 }
 0x21f   : > { %v1131_v50 = vadd.f32 %v1054_v38, %v1977_v19  ;;  %v744_v19 = vsel %vm663_vm2, 0.0, %v2118_v33  ;;  %v1132_v38 = vadd.f32 %v1056_v59, %v1965_v16 }
 0x220   : > { %v1201_v13 = vadd.f32 %v2208_v27, %v1162_v47  ;;  %v1113_v34 = vadd.f32 %v1018_v49, %v744_v19  ;;  %v981_v33 = vsel %vm952_vm3, %v920_v20, %v922_v36  ;;  %v1115_v19 = vadd.f32 %v1022_v63, %v1973_v18 }
 0x221   : > { %1248 = vxpose.xlu0.b32.start [1/16] (narrow) %v1200_v46, 32  ;;  %v2217_v48 = vpop.permute.xlu0 %1027  ;;  %v1163_v12 = vadd.f32 %v1131_v50, %v978_v11  ;;  %v924_v46 = vrot.slane %v2193_v62, 1  ;;  %v931_v50 = vrot.slane %v2213_v39, 1  ;;  %v926_v39 = vrot.slane %v2188_v56, 1 }
 0x222   : > { %v1060_v5 = vpop.permute.xlu1 %1059  ;;  %v930_v63 = vrot.slane %v2199_v15, 1 }
 0x223   : > { %v1202_v14 = vadd.f32 %v2208_v27, %v1163_v12  ;;  %v979_v16 = vsel %vm952_vm3, %v922_v36, %v924_v46  ;;  %v1134_v15 = vadd.f32 %v1060_v5, %v1987_v28 }
 0x225   : > { %1249 = vxpose.xlu0.b32.cont [2/16] (narrow) %v1201_v13, 32  ;;  %v1026_v35 = vpop.permute.xlu0 %1025  ;;  %v1145_v13 = vadd.f32 %v1113_v34, %v981_v33 }
 0x226   : > { %v833_v6 = vpop.permute.xlu1 %832 }
 0x227   : > { %v1184_v34 = vadd.f32 %v2208_v27, %v1145_v13 }
 0x229   : > { %1250 = vxpose.xlu0.b32.cont [3/16] (narrow) %v1202_v14, 32  ;;  %v2227_v22 = vpop.permute.xlu0 %838 }
 0x22a   : > { %v865_v57 = vpop.permute.xlu1 %864 }
 0x22b   : > { %v929_v21 = vrot.slane %v865_v57, 1 }
 0x22d   : > { %v976_v47 = vsel %vm952_vm3, %v927_v32, %v929_v21  ;;  %v2239_v49 = vpop.permute.xlu0 %870  ;;  %v974_v59 = vsel %vm952_vm3, %v929_v21, %v931_v50  ;;  %v1114_v32 = vadd.f32 %v2178_v37, %v1955_v7  ;;  %v977_v21 = vsel %vm952_vm3, %v924_v46, %v926_v39 }
 0x22e   : > { %v1164_v11 = vadd.f32 %v1132_v38, %v976_v47  ;;  %v1058_v12 = vpop.permute.xlu1 %1057  ;;  %v928_v47 = vrot.slane %v833_v6, 1  ;;  %v1147_v7 = vadd.f32 %v1115_v19, %v977_v21 }
 0x22f   : > { %v1133_v4 = vadd.f32 %v1058_v12, %v1999_v31  ;;  %v1146_v36 = vadd.f32 %v1114_v32, %v979_v16  ;;  %v935_v16 = vrot.slane %v2239_v49, 1 }
 0x230   : > { %v1203_v62 = vadd.f32 %v2208_v27, %v1164_v11  ;;  %v975_v33 = vsel %vm952_vm3, %v926_v39, %v928_v47  ;;  %v1116_v11 = vadd.f32 %v2190_v60, %v1969_v17  ;;  %v1186_v46 = vadd.f32 %v2208_v27, %v1147_v7 }
 0x231   : > { %v1165_v14 = vadd.f32 %v1133_v4, %v974_v59  ;;  %v1032_v31 = vpop.permute.xlu0 %1031  ;;  %v1185_v18 = vadd.f32 %v2208_v27, %v1146_v36  ;;  %v1117_v4 = vadd.f32 %v1026_v35, %v1995_v30  ;;  %v1118_v36 = vadd.f32 %v2217_v48, %v1991_v29 }
 0x232   : > { %v2251_v57 = vpop.permute.xlu1 %1063  ;;  %1251 = vxpose.xlu0.b32.cont [4/16] (narrow) %v1203_v62, 32  ;;  %v1148_v13 = vadd.f32 %v1116_v11, %v975_v33  ;;  %v973_v62 = vsel %vm952_vm3, %v928_v47, %v930_v63  ;;  %v1120_v33 = vadd.f32 %v1032_v31, %v2020_v41 }
 0x233   : > { %v1204_v38 = vadd.f32 %v2208_v27, %v1165_v14  ;;  %v1149_v49 = vadd.f32 %v1117_v4, %v973_v62 }
 0x234   : > { %v1187_v28 = vadd.f32 %v2208_v27, %v1148_v13 }
 0x235   : > { %1216 = vxpose.xlu1.b32.start [1/16] (narrow) %v1184_v34, 32  ;;  %v1062_v56 = vpop.permute.xlu0 %1061 }
 0x236   : > { %v837_v37 = vpop.permute.xlu1 %836  ;;  %1252 = vxpose.xlu0.b32.cont [5/16] (narrow) %v1204_v38, 32  ;;  %v1135_v39 = vadd.f32 %v1062_v56, %v2024_v42  ;;  %v1188_v38 = vadd.f32 %v2208_v27, %v1149_v49 }
 0x237   : > { %v932_v32 = vrot.slane %v837_v37, 1 }
 0x239   : > { %1217 = vxpose.xlu1.b32.cont [2/16] (narrow) %v1185_v18, 32  ;;  %v2264_v6 = vpop.permute.xlu0 %842  ;;  %v971_v5 = vsel %vm952_vm3, %v930_v63, %v932_v32 }
 0x23a   : > { %v869_v12 = vpop.permute.xlu1 %868  ;;  %v1150_v47 = vadd.f32 %v1118_v36, %v971_v5  ;;  %v938_v62 = vrot.slane %v2264_v6, 1 }
 0x23b   : > { %v933_v59 = vrot.slane %v869_v12, 1 }
 0x23d   : > { %v970_v17 = vsel %vm952_vm3, %v933_v59, %v935_v16  ;;  %v972_v60 = vsel %vm952_vm3, %v931_v50, %v933_v59  ;;  %1218 = vxpose.xlu1.b32.cont [3/16] (narrow) %v1186_v46, 32  ;;  %v2276_v35 = vpop.permute.xlu0 %874  ;;  %v934_v50 = vrot.slane %v2227_v22, 1  ;;  %v1189_v22 = vadd.f32 %v2208_v27, %v1150_v47 }
 0x23e   : > { %v1166_v14 = vadd.f32 %v1134_v15, %v972_v60  ;;  %v1030_v30 = vpop.permute.xlu1 %1029  ;;  %v1167_v19 = vadd.f32 %v1135_v39, %v970_v17  ;;  %v939_v13 = vrot.slane %v2276_v35, 1  ;;  %v1136_v15 = vadd.f32 %v2251_v57, %v2016_v40 }
 0x23f   : > { %v1119_v7 = vadd.f32 %v1030_v30, %v2028_v43  ;;  %v969_v56 = vsel %vm952_vm3, %v932_v32, %v934_v50 }
 0x240   : > { %v1205_v34 = vadd.f32 %v2208_v27, %v1166_v14  ;;  %v1206_v37 = vadd.f32 %v2208_v27, %v1167_v19 }
 0x241   : > { %1219 = vxpose.xlu1.b32.cont [4/16] (narrow) %v1187_v28, 32  ;;  %v1036_v21 = vpop.permute.xlu0 %1035  ;;  %v1151_v48 = vadd.f32 %v1119_v7, %v969_v56 }
 0x242   : > { %v1068_v42 = vpop.permute.xlu1 %1067  ;;  %1253 = vxpose.xlu0.b32.cont [6/16] (narrow) %v1205_v34, 32  ;;  %v1122_v34 = vadd.f32 %v1036_v21, %v2052_v53 }
 0x243   : > { %v1190_v12 = vadd.f32 %v2208_v27, %v1151_v48  ;;  %v1138_v56 = vadd.f32 %v1068_v42, %v2048_v52 }
 0x245   : > { %1220 = vxpose.xlu1.b32.cont [5/16] (narrow) %v1188_v38, 32  ;;  %v1066_v29 = vpop.permute.xlu0 %1065 }
 0x246   : > { %v841_v18 = vpop.permute.xlu1 %840  ;;  %1254 = vxpose.xlu0.b32.cont [7/16] (narrow) %v1206_v37, 32  ;;  %v1137_v32 = vadd.f32 %v1066_v29, %v2056_v54 }
 0x247   : > { %v936_v63 = vrot.slane %v841_v18, 1 }
 0x249   : > { %v967_v11 = vsel %vm952_vm3, %v934_v50, %v936_v63  ;;  %1221 = vxpose.xlu1.b32.cont [6/16] (narrow) %v1189_v22, 32  ;;  %v2294_v46 = vpop.permute.xlu0 %846  ;;  %v965_v57 = vsel %vm952_vm3, %v936_v63, %v938_v62 }
 0x24a   : > { %v873_v43 = vpop.permute.xlu1 %872  ;;  %v1152_v4 = vadd.f32 %v1120_v33, %v967_v11  ;;  %v942_v18 = vrot.slane %v2294_v46, 1 }
 0x24b   : > { %v937_v59 = vrot.slane %v873_v43, 1 }
 0x24c   : > { %v1191_v30 = vadd.f32 %v2208_v27, %v1152_v4 }
 0x24d   : > { %v966_v41 = vsel %vm952_vm3, %v937_v59, %v939_v13  ;;  %v968_v31 = vsel %vm952_vm3, %v935_v16, %v937_v59  ;;  %1222 = vxpose.xlu1.b32.cont [7/16] (narrow) %v1190_v12, 32  ;;  %v2306_v39 = vpop.permute.xlu0 %878 }
 0x24e   : > { %v1168_v17 = vadd.f32 %v1136_v15, %v968_v31  ;;  %v1034_v60 = vpop.permute.xlu1 %1033  ;;  %v1169_v40 = vadd.f32 %v1137_v32, %v966_v41  ;;  %v943_v7 = vrot.slane %v2306_v39, 1 }
 0x24f   : > { %v1121_v14 = vadd.f32 %v1034_v60, %v2060_v55 }
 0x250   : > { %v1207_v6 = vadd.f32 %v2208_v27, %v1168_v17  ;;  %v1208_v28 = vadd.f32 %v2208_v27, %v1169_v40 }
 0x251   : > { %v1153_v35 = vadd.f32 %v1121_v14, %v965_v57  ;;  %1223 = vxpose.xlu1.b32.cont [8/16] (narrow) %v1191_v30, 32  ;;  %v1040_v49 = vpop.permute.xlu0 %1039 }
 0x252   : > { %v1072_v16 = vpop.permute.xlu1 %1071  ;;  %1255 = vxpose.xlu0.b32.cont [8/16] (narrow) %v1207_v6, 32 }
 0x253   : > { %v1192_v54 = vadd.f32 %v2208_v27, %v1153_v35  ;;  %v1140_v14 = vadd.f32 %v1072_v16, %v2068_v1 }
 0x255   : > { %1224 = vxpose.xlu1.b32.cont [9/16] (narrow) %v1192_v54, 32  ;;  %v1070_v55 = vpop.permute.xlu0 %1069 }
 0x256   : > { %v845_v5 = vpop.permute.xlu1 %844  ;;  %1256 = vxpose.xlu0.b32.cont [9/16] (narrow) %v1208_v28, 32  ;;  %v1139_v21 = vadd.f32 %v1070_v55, %v2076_v9 }
 0x257   : > { %v940_v19 = vrot.slane %v845_v5, 1 }
 0x259   : > { %v963_v36 = vsel %vm952_vm3, %v938_v62, %v940_v19  ;;  %v851_v47 = vpop.permute.xlu0 %850  ;;  %v961_v52 = vsel %vm952_vm3, %v940_v19, %v942_v18 }
 0x25a   : > { %v1154_v50 = vadd.f32 %v1122_v34, %v963_v36  ;;  %v877_v38 = vpop.permute.xlu1 %876  ;;  %v946_v30 = vrot.slane %v851_v47, 1 }
 0x25b   : > { %v941_v37 = vrot.slane %v877_v38, 1 }
 0x25c   : > { %v1193_v29 = vadd.f32 %v2208_v27, %v1154_v50 }
 0x25d   : > { %v962_v48 = vsel %vm952_vm3, %v941_v37, %v943_v7  ;;  %v964_v53 = vsel %vm952_vm3, %v939_v13, %v941_v37  ;;  %v883_v33 = vpop.permute.xlu0 %882 }
 0x25e   : > { %v1170_v63 = vadd.f32 %v1138_v56, %v964_v53  ;;  %v1038_v22 = vpop.permute.xlu1 %1037  ;;  %1225 = vxpose.xlu1.b32.cont [10/16] (narrow) %v1193_v29, 32  ;;  %v1171_v43 = vadd.f32 %v1139_v21, %v962_v48  ;;  %v947_v60 = vrot.slane %v883_v33, 1 }
 0x25f   : > { %v1123_v11 = vadd.f32 %v1038_v22, %v2080_v10  ;;  %v1124_v10 = vadd.f32 %v1040_v49, %v2072_v8 }
 0x260   : > { %v1209_v42 = vadd.f32 %v2208_v27, %v1170_v63  ;;  %v1210_v9 = vadd.f32 %v2208_v27, %v1171_v43 }
 0x261   : > { %v1155_v46 = vadd.f32 %v1123_v11, %v961_v52  ;;  %v1044_v4 = vpop.permute.xlu0 %1043 }
 0x262   : > { %v1076_v12 = vpop.permute.xlu1 %1075  ;;  %1257 = vxpose.xlu0.b32.cont [10/16] (narrow) %v1209_v42, 32 }
 0x263   : > { %v1194_v13 = vadd.f32 %v2208_v27, %v1155_v46  ;;  %v1142_v21 = vadd.f32 %v1076_v12, %v2089_v23 }
 0x265   : > { %1226 = vxpose.xlu1.b32.cont [11/16] (narrow) %v1194_v13, 32  ;;  %v1074_v15 = vpop.permute.xlu0 %1073 }
 0x266   : > { %v849_v59 = vpop.permute.xlu1 %848  ;;  %1258 = vxpose.xlu0.b32.cont [11/16] (narrow) %v1210_v9, 32  ;;  %v1141_v8 = vadd.f32 %v1074_v15, %v2097_v25 }
 0x267   : > { %v944_v62 = vrot.slane %v849_v59, 1 }
 0x269   : > { %v959_v41 = vsel %vm952_vm3, %v942_v18, %v944_v62  ;;  %v855_v17 = vpop.permute.xlu0 %854  ;;  %v957_v1 = vsel %vm952_vm3, %v944_v62, %v946_v30 }
 0x26a   : > { %v1156_v31 = vadd.f32 %v1124_v10, %v959_v41  ;;  %v881_v32 = vpop.permute.xlu1 %880  ;;  %v950_v18 = vrot.slane %v855_v17, 1 }
 0x26b   : > { %v945_v39 = vrot.slane %v881_v32, 1 }
 0x26c   : > { %v1195_v40 = vadd.f32 %v2208_v27, %v1156_v31  ;;  %v983_v52 = vsel %vm952_vm3, %v950_v18, %v920_v20 }
 0x26d   : > { %v958_v57 = vsel %vm952_vm3, %v945_v39, %v947_v60  ;;  %v960_v6 = vsel %vm952_vm3, %v943_v7, %v945_v39  ;;  %v887_v28 = vpop.permute.xlu0 %886  ;;  %v662_v7 = vadd.s32 120, %v1934_v61 }
 0x26e   : > { %v1172_v35 = vadd.f32 %v1140_v14, %v960_v6  ;;  %v1042_v49 = vpop.permute.xlu1 %1041  ;;  %1227 = vxpose.xlu1.b32.cont [12/16] (narrow) %v1195_v40, 32  ;;  %v1173_v5 = vadd.f32 %v1141_v8, %v958_v57  ;;  %v951_v29 = vrot.slane %v887_v28, 1 }
 0x26f   : > { %v1125_v54 = vadd.f32 %v1042_v49, %v2101_v26  ;;  %v1126_v26 = vadd.f32 %v1044_v4, %v2093_v24  ;;  %vm791_vm4 = vcmp.eq.s32.totalorder %v662_v7, 127 }
 0x270   : > { %v1211_v16 = vadd.f32 %v2208_v27, %v1172_v35  ;;  %v1212_v36 = vadd.f32 %v2208_v27, %v1173_v5  ;;  %v984_v42 = vsel %vm952_vm3, %v951_v29, %v921_v0  ;;  %v1000_v20 = vsel %vm791_vm4, 0.0, %v983_v52 }
 0x271   : > { %v1157_v55 = vadd.f32 %v1125_v54, %v957_v1  ;;  %v1080_v25 = vpop.permute.xlu0 %1079  ;;  %v1016_v44 = vsel %vm791_vm4, 0.0, %v984_v42 }
 0x272   : > { %v1048_v19 = vpop.permute.xlu1 %1047  ;;  %1259 = vxpose.xlu0.b32.cont [12/16] (narrow) %v1211_v16, 32  ;;  %v1144_v12 = vadd.f32 %v1080_v25, %v2126_v58 }
 0x273   : > { %v1196_v34 = vadd.f32 %v2208_v27, %v1157_v55  ;;  %v1128_v23 = vadd.f32 %v1048_v19, %v2122_v51 }
 0x274   : > { %v1176_v9 = vadd.f32 %v1144_v12, %v1016_v44 }
 0x275   : > { %1228 = vxpose.xlu1.b32.cont [13/16] (narrow) %v1196_v34, 32  ;;  %v1078_v48 = vpop.permute.xlu0 %1077  ;;  %v1160_v51 = vadd.f32 %v1128_v23, %v1000_v20 }
 0x276   : > { %v853_v50 = vpop.permute.xlu1 %852  ;;  %1260 = vxpose.xlu0.b32.cont [13/16] (narrow) %v1212_v36, 32  ;;  %v1143_v33 = vadd.f32 %v1078_v48, %v2134_v2  ;;  %v1215_v58 = vadd.f32 %v2208_v27, %v1176_v9 }
 0x277   : > { %v948_v38 = vrot.slane %v853_v50, 1  ;;  %v1199_v61 = vadd.f32 %v2208_v27, %v1160_v51 }
 0x279   : > { %v955_v47 = vsel %vm952_vm3, %v946_v30, %v948_v38  ;;  %v953_v4 = vsel %vm952_vm3, %v948_v38, %v950_v18 }
 0x27a   : > { %v1158_v37 = vadd.f32 %v1126_v26, %v955_v47  ;;  %v885_v56 = vpop.permute.xlu1 %884 }
 0x27b   : > { %v949_v53 = vrot.slane %v885_v56, 1 }
 0x27c   : > { %v1197_v63 = vadd.f32 %v2208_v27, %v1158_v37 }
 0x27d   : > { %v954_v22 = vsel %vm952_vm3, %v949_v53, %v951_v29  ;;  %v956_v24 = vsel %vm952_vm3, %v947_v60, %v949_v53 }
 0x27e   : > { %v1174_v11 = vadd.f32 %v1142_v21, %v956_v24  ;;  %v1046_v43 = vpop.permute.xlu1 %1045  ;;  %1229 = vxpose.xlu1.b32.cont [14/16] (narrow) %v1197_v63, 32  ;;  %v1175_v2 = vadd.f32 %v1143_v33, %v954_v22 }
 0x27f   : > { %v1127_v46 = vadd.f32 %v1046_v43, %v2138_v3 }
 0x280   : > { %v1213_v45 = vadd.f32 %v2208_v27, %v1174_v11  ;;  %v1214_v3 = vadd.f32 %v2208_v27, %v1175_v2 }
 0x281   : > { %v1159_v13 = vadd.f32 %v1127_v46, %v953_v4 }
 0x282   : > { %1261 = vxpose.xlu0.b32.cont [14/16] (narrow) %v1213_v45, 32 }
 0x283   : > { %v1198_v0 = vadd.f32 %v2208_v27, %v1159_v13 }
 0x285   : > { %1230 = vxpose.xlu1.b32.cont [15/16] (narrow) %v1198_v0, 32 }
 0x286   : > { %1262 = vxpose.xlu0.b32.cont [15/16] (narrow) %v1214_v3, 32 }
 0x289   : > { %1231 = vxpose.xlu1.b32.end [16/16] (narrow) %v1199_v61, 32 }
 0x28a   : > { %1263 = vxpose.xlu0.b32.end [16/16] (narrow) %v1215_v58, 32 }
 0x2cd   : > { %v1232_v59 = vpop.trf.xlu1 }
 0x2ce   : > { %1280 = vst [vmem:[%s229_s6] sm:$0xff] %v1232_v59  ;;  %1288 = vadd.xlane.f32.xlu0 %v1232_v59  ;;  %v1264_v15 = vpop.trf.xlu0  ;;  %v1308_v10 = vmul.f32 %v1232_v59, %v1232_v59 }
 0x2cf   : > { %1284 = vst [vmem:[%s229_s6 + $0x20] sm:$0xff] %v1264_v15  ;;  %v1312_v17 = vmul.f32 %v1264_v15, %v1264_v15 }
 0x2d1   : > { %v1233_v62 = vpop.trf.xlu1 }
 0x2d2   : > { %1281 = vst [vmem:[%s229_s6 + $0x8] sm:$0xff] %v1233_v62  ;;  %1290 = vadd.xlane.f32.xlu1 %v1233_v62  ;;  %1296 = vadd.xlane.f32.xlu0 %v1264_v15  ;;  %v1265_v27 = vpop.trf.xlu0  ;;  %v1309_v32 = vmul.f32 %v1233_v62, %v1233_v62 }
 0x2d3   : > { %1285 = vst [vmem:[%s229_s6 + $0x28] sm:$0xff] %v1265_v27  ;;  %v1313_v14 = vmul.f32 %v1265_v27, %v1265_v27 }
 0x2d5   : > { %v1234_v41 = vpop.trf.xlu1 }
 0x2d6   : > { %1316 = vadd.xlane.f32.xlu0 %v1308_v10  ;;  %1298 = vadd.xlane.f32.xlu1 %v1265_v27  ;;  %1282 = vst [vmem:[%s229_s6 + $0x10] sm:$0xff] %v1234_v41  ;;  %v1266_v31 = vpop.trf.xlu0  ;;  %v1310_v30 = vmul.f32 %v1234_v41, %v1234_v41 }
 0x2d7   : > { %1286 = vst [vmem:[%s229_s6 + $0x30] sm:$0xff] %v1266_v31  ;;  %v1314_v57 = vmul.f32 %v1266_v31, %v1266_v31 }
 0x2d9   : > { %v1235_v60 = vpop.trf.xlu1 }
 0x2da   : > { %1324 = vadd.xlane.f32.xlu0 %v1312_v17  ;;  %1318 = vadd.xlane.f32.xlu1 %v1309_v32  ;;  %1283 = vst [vmem:[%s229_s6 + $0x18] sm:$0xff] %v1235_v60  ;;  %v1267_v39 = vpop.trf.xlu0  ;;  %v1311_v40 = vmul.f32 %v1235_v60, %v1235_v60 }
 0x2db   : > { %1287 = vst [vmem:[%s229_s6 + $0x38] sm:$0xff] %v1267_v39  ;;  %v1315_v6 = vmul.f32 %v1267_v39, %v1267_v39 }
 0x2de   : > { %1292 = vadd.xlane.f32.xlu0 %v1234_v41  ;;  %1326 = vadd.xlane.f32.xlu1 %v1313_v14 }
 0x2e2   : > { %1294 = vadd.xlane.f32.xlu1 %v1235_v60  ;;  %1300 = vadd.xlane.f32.xlu0 %v1266_v31 }
 0x2e6   : > { %1320 = vadd.xlane.f32.xlu0 %v1310_v30  ;;  %1302 = vadd.xlane.f32.xlu1 %v1267_v39 }
 0x2ea   : > { %1328 = vadd.xlane.f32.xlu0 %v1314_v57  ;;  %1322 = vadd.xlane.f32.xlu1 %v1311_v40 }
 0x2ee   : > { %1330 = vadd.xlane.f32.xlu1 %v1315_v6 }
 0x35b   : > { %v1289_v8 = vpop.xlane.xlu0 %1288 }
 0x35f   : > { %v1291_v35 = vpop.xlane.xlu1 %1290  ;;  %v1297_v49 = vpop.xlane.xlu0 %1296 }
 0x360   : > { %v1304_v16 = vadd.f32 %v1297_v49, %v1289_v8 }
 0x363   : > { %v1299_v54 = vpop.xlane.xlu1 %1298  ;;  %v1317_v28 = vpop.xlane.xlu0 %1316 }
 0x364   : > { %v1305_v25 = vadd.f32 %v1299_v54, %v1291_v35 }
 0x367   : > { %v1319_v5 = vpop.xlane.xlu1 %1318  ;;  %v1325_v1 = vpop.xlane.xlu0 %1324 }
 0x368   : > { %v1332_v55 = vadd.f32 %v1325_v1, %v1317_v28 }
 0x36a   : > { %v1337_v19 = vsel %vm1336_vm5, %v1304_v16, %v1332_v55 }
 0x36b   : > { %1342 = vst.msk [vmem:[%s235_s11] sm:$0xff] %vm1341_vm6, %v1337_v19  ;;  %v1327_v34 = vpop.xlane.xlu1 %1326  ;;  %v1293_v36 = vpop.xlane.xlu0 %1292 }
 0x36c   : > { %v1333_v50 = vadd.f32 %v1327_v34, %v1319_v5 }
 0x36e   : > { %v1338_v38 = vsel %vm1336_vm5, %v1305_v25, %v1333_v50 }
 0x36f   : > { %1343 = vst.msk [vmem:[%s235_s11 + $0x8] sm:$0xff] %vm1341_vm6, %v1338_v38  ;;  %v1295_v26 = vpop.xlane.xlu1 %1294  ;;  %v1301_v47 = vpop.xlane.xlu0 %1300 }
 0x370   : > { %v1306_v29 = vadd.f32 %v1301_v47, %v1293_v36 }
 0x373   : > { %v1303_v7 = vpop.xlane.xlu1 %1302  ;;  %v1321_v37 = vpop.xlane.xlu0 %1320 }
 0x374   : > { %v1307_v63 = vadd.f32 %v1303_v7, %v1295_v26 }
 0x377   : > { %v1323_v56 = vpop.xlane.xlu1 %1322  ;;  %v1329_v18 = vpop.xlane.xlu0 %1328 }
 0x378   : > { %v1334_v48 = vadd.f32 %v1329_v18, %v1321_v37 }
 0x37a   : > { %v1339_v53 = vsel %vm1336_vm5, %v1306_v29, %v1334_v48 }
 0x37b   : > { %1344 = vst.msk [vmem:[%s235_s11 + $0x10] sm:$0xff] %vm1341_vm6, %v1339_v53  ;;  %v1331_v21 = vpop.xlane.xlu1 %1330 }
 0x37c   : > { %v1335_v22 = vadd.f32 %v1331_v21, %v1323_v56 }
 0x37e   : > { %v1340_v24 = vsel %vm1336_vm5, %v1307_v63, %v1335_v22 }
 0x37f   : > { %1345 = vst.msk [vmem:[%s235_s11 + $0x18] sm:$0xff] %vm1341_vm6, %v1340_v24 }
 0x380 PF: > { %p15_p9 = scmp.ge.s32.totalorder %s1792_s20, 6   ;;  %s2418_s15 = smov %s1730_s16 }
 0x381   : > { %s2419_s16 = smov %s1734_s17  ;;  %s2420_s17 = smov %s1802_s23 }
 0x382   : > { %s2421_s18 = smov %s1792_s20  ;;  %17 = sbr.rel (!%p15_p9) target bundleno = 3 (0x3), region = 84 }
 0x389   :  { %1386 = vsyncpa [#allocation3], 1 }
 0x38a   :  { %1388 = vsyncpa [#allocation3 + $0x1], 1 }

</bundles_post_ra>
